<compile_context>
chip_gen: v6e
topology: v6e:2x2x1
jax: 0.10.0
libtpu: 0.0.40
codegen_flags: <defaults>
</compile_context>

<pallas_src>
import functools

import jax
import jax.numpy as jnp
from jax import lax
from jax.experimental import pallas as pl
from jax.experimental.pallas import tpu as pltpu

_GELU_C = 0.7978845608028654  # sqrt(2/pi)


def _gelu_tanh(x):
    # tanh-form GELU: one EUP transcendental instead of a long VALU erf polynomial.
    # Max abs deviation from torch.nn.GELU() (exact erf form) is ~1e-3, well inside the
    # comparison tolerance used below.
    return 0.5 * x * (1.0 + jnp.tanh(_GELU_C * (x + 0.044715 * x * x * x)))


def _layer_norm(x, gamma, beta, eps=1e-5):
    mu = jnp.mean(x, axis=-1, keepdims=True)
    var = jnp.mean((x - mu) ** 2, axis=-1, keepdims=True)
    return (x - mu) * lax.rsqrt(var + eps) * gamma + beta


def encoder_layer_kernel(hs_ref, mask_ref,
                         wq_ref, bq_ref, wk_ref, bk_ref, wv_ref, bv_ref,
                         wo_ref, bo_ref, g1_ref, be1_ref,
                         w1_ref, b1_ref, w2_ref, b2_ref, g2_ref, be2_ref,
                         out_ref, *, n_head, d_k, d_v):
    x = hs_ref[...]                       # (L, D) f32 (residual path stays f32)
    m = mask_ref[...]                     # (1, L) f32 {0,1}
    L = x.shape[0]

    xb = x.astype(jnp.bfloat16)           # bf16 MXU inputs, f32 accumulation

    # ----- QKV projections (bf16 x bf16 -> f32 accumulate, f32 bias add) -----
    q = jnp.dot(xb, wq_ref[...], preferred_element_type=jnp.float32) + bq_ref[...]
    k = jnp.dot(xb, wk_ref[...], preferred_element_type=jnp.float32) + bk_ref[...]
    v = jnp.dot(xb, wv_ref[...], preferred_element_type=jnp.float32) + bv_ref[...]

    # ----- multi-head attention with heads batched into single 3-D matmuls -----
    inv_temp = 1.0 / (d_k ** 0.5)
    qh = (q * inv_temp).reshape(L, n_head, d_k).transpose(1, 0, 2).astype(jnp.bfloat16)
    kh = k.reshape(L, n_head, d_k).transpose(1, 0, 2).astype(jnp.bfloat16)
    vh = v.reshape(L, n_head, d_v).transpose(1, 0, 2).astype(jnp.bfloat16)

    s = jnp.einsum('hqd,hkd->hqk', qh, kh,
                   preferred_element_type=jnp.float32)            # (H, L, L) f32

    # Exact masked_fill semantics (matches PyTorch even for fully-masked padded rows).
    # Boolean mask computed once on (L, L), single select over the batched scores.
    mask2d = jnp.transpose(m) * m                                  # (L, L)
    s = jnp.where((mask2d == 0.0)[None], -1e9, s)

    s = s - jnp.max(s, axis=-1, keepdims=True)
    e = jnp.exp(s)
    p = e * pl.reciprocal(jnp.sum(e, axis=-1, keepdims=True), approx=True)  # softmax(-1)

    o = jnp.einsum('hqk,hkd->hqd', p.astype(jnp.bfloat16), vh,
                   preferred_element_type=jnp.float32)             # (H, L, d_v)
    sa = o.transpose(1, 0, 2).reshape(L, n_head * d_v)             # lane-contiguous merge

    fc = jnp.dot(sa.astype(jnp.bfloat16), wo_ref[...],
                 preferred_element_type=jnp.float32) + bo_ref[...]
    ln1 = _layer_norm(fc + x, g1_ref[...], be1_ref[...])           # MHA output (f32)

    # ----- feed forward (intermediate_size == 4*d_model -> fc1_proj/fc2_proj are None) -----
    h1 = _gelu_tanh(jnp.dot(ln1.astype(jnp.bfloat16), w1_ref[...],
                            preferred_element_type=jnp.float32) + b1_ref[...])
    h2 = jnp.dot(h1.astype(jnp.bfloat16), w2_ref[...],
                 preferred_element_type=jnp.float32) + b2_ref[...]
    out_ref[...] = _layer_norm(h2 + ln1, g2_ref[...], be2_ref[...]).astype(out_ref.dtype)


def encoder_layer(hs, att_mask, params, *, n_head, d_k, d_v):
    B, L, D = hs.shape
    mask3 = att_mask.reshape(B, 1, L).astype(jnp.float32)

    # Matmul weights are pre-cast to bf16 in the wrapper (halves weight DMA and VMEM,
    # native MXU rate); biases / LayerNorm params stay f32.
    mm_weights = {"wq", "wk", "wv", "wo", "w1", "w2"}
    names = ["wq", "bq", "wk", "bk", "wv", "bv", "wo", "bo",
             "g1", "be1", "w1", "b1", "w2", "b2", "g2", "be2"]
    weight_args = [params[n].astype(jnp.bfloat16) if n in mm_weights
                   else params[n].astype(jnp.float32) for n in names]

    def full_spec(a):
        # Constant index_map: block never changes across the grid, so it is fetched once.
        return pl.BlockSpec(a.shape, lambda b, _nd=a.ndim: (0,) * _nd)

    in_specs = ([pl.BlockSpec((None, L, D), lambda b: (b, 0, 0)),   # squeezed batch dim
                 pl.BlockSpec((None, 1, L), lambda b: (b, 0, 0))]
                + [full_spec(a) for a in weight_args])
    out_spec = pl.BlockSpec((None, L, D), lambda b: (b, 0, 0))

    kernel = functools.partial(encoder_layer_kernel, n_head=n_head, d_k=d_k, d_v=d_v)
    return pl.pallas_call(
        kernel,
        out_shape=jax.ShapeDtypeStruct((B, L, D), jnp.float32),
        grid=(B,),
        in_specs=in_specs,
        out_specs=out_spec,
        compiler_params=pltpu.CompilerParams(
            dimension_semantics=("parallel",),      # batch axis shardable across cores
            vmem_limit_bytes=48 * 1024 * 1024),     # safe on v5e/v6e (128 MiB) and v7x (64 MiB)
    )(hs.astype(jnp.float32), mask3, *weight_args)


# ---------------- pure-JAX f32 reference (for sanity checking only) ----------------
def ref_encoder_layer(hs, mask, p, n_head, d_k, d_v):
    B, L, D = hs.shape
    P = lax.Precision.HIGHEST

    def lin(x, w, b):
        return jnp.dot(x, w, precision=P) + b

    def ln(x, g, b):
        mu = x.mean(-1, keepdims=True)
        var = ((x - mu) ** 2).mean(-1, keepdims=True)
        return (x - mu) / jnp.sqrt(var + 1e-5) * g + b

    q = lin(hs, p["wq"], p["bq"]).reshape(B, L, n_head, d_k).transpose(0, 2, 1, 3)
    k = lin(hs, p["wk"], p["bk"]).reshape(B, L, n_head, d_k).transpose(0, 2, 1, 3)
    v = lin(hs, p["wv"], p["bv"]).reshape(B, L, n_head, d_v).transpose(0, 2, 1, 3)
    m2 = (mask[:, :, None] * mask[:, None, :])[:, None]            # (B,1,L,L)
    s = jnp.einsum("bhqd,bhkd->bhqk", q / (d_k ** 0.5), k, precision=P)
    s = jnp.where(m2 == 0, -1e9, s)
    a = jax.nn.softmax(s, axis=-1)
    o = jnp.einsum("bhqk,bhkd->bhqd", a, v, precision=P)
    o = o.transpose(0, 2, 1, 3).reshape(B, L, n_head * d_v)
    fc = lin(o, p["wo"], p["bo"])
    ln1 = ln(fc + hs, p["g1"], p["be1"])
    h1 = jax.nn.gelu(lin(ln1, p["w1"], p["b1"]), approximate=False)
    h2 = lin(h1, p["w2"], p["b2"])
    return ln(h2 + ln1, p["g2"], p["be2"])


if __name__ == "__main__":
    # Small, PyTorch-consistent shapes: EncoderLayer(n_head=4, d_model=32,
    # intermediate_size=128 (=4*d_model), d_k=8, d_v=8); batch=2, seq=8.
    B, L = 2, 8
    n_head, d_model, d_k, d_v = 4, 32, 8, 8
    d_ff = 4 * d_model  # intermediate_size == 4*hidden -> fc1_proj/fc2_proj are None

    key = jax.random.PRNGKey(0)
    ks = jax.random.split(key, 16)

    def w(k, shape, scale=0.05):
        return (scale * jax.random.normal(k, shape)).astype(jnp.float32)

    params = {
        "wq": w(ks[0], (d_model, n_head * d_k)), "bq": w(ks[1], (1, n_head * d_k)),
        "wk": w(ks[2], (d_model, n_head * d_k)), "bk": w(ks[3], (1, n_head * d_k)),
        "wv": w(ks[4], (d_model, n_head * d_v)), "bv": w(ks[5], (1, n_head * d_v)),
        "wo": w(ks[6], (n_head * d_v, d_model)), "bo": w(ks[7], (1, d_model)),
        "g1": (1.0 + w(ks[8], (1, d_model), 0.1)), "be1": w(ks[9], (1, d_model), 0.1),
        "w1": w(ks[10], (d_model, d_ff)), "b1": w(ks[11], (1, d_ff)),
        "w2": w(ks[12], (d_ff, d_model)), "b2": w(ks[13], (1, d_model)),
        "g2": (1.0 + w(ks[14], (1, d_model), 0.1)), "be2": w(ks[15], (1, d_model), 0.1),
    }
    # TODO(synk): PowerBERT token-pruning branch (attn-score sort + gather, token_mask
    # parameter) is data-dependent gather and is not implemented; the default forward
    # path (powerbert_cut=None, find_powerbert_conf=False) never uses it.

    hs = jax.random.normal(jax.random.PRNGKey(42), (B, L, d_model), dtype=jnp.float32)
    att_mask = jnp.ones((B, L), dtype=jnp.float32).at[1, -2:].set(0.0)  # some padding

    out = encoder_layer(hs, att_mask, params, n_head=n_head, d_k=d_k, d_v=d_v)
    out = jax.block_until_ready(out)

    ref = ref_encoder_layer(hs, att_mask, params, n_head, d_k, d_v)
    assert out.shape == (B, L, d_model)
    # Tolerance covers bf16 MXU inputs (f32 accumulation), tanh-GELU, and approx
    # reciprocal vs the exact-f32 / exact-erf reference; observed error is ~2-3e-3.
    assert jnp.allclose(out, ref, rtol=1e-2, atol=1e-2), float(jnp.max(jnp.abs(out - ref)))

    print("KERNEL_OK")
</pallas_src>

<mosaic_0001>
module attributes {stable_mosaic.version = 11 : i64} {
  func.func @encoder_layer_kernel(%arg0: i32, %arg1: memref<1x8x32xf32, #tpu.memory_space<vmem>>, %arg2: memref<1x1x8xf32, #tpu.memory_space<vmem>>, %arg3: memref<32x32xbf16, #tpu.memory_space<vmem>>, %arg4: memref<1x32xf32, #tpu.memory_space<vmem>>, %arg5: memref<32x32xbf16, #tpu.memory_space<vmem>>, %arg6: memref<1x32xf32, #tpu.memory_space<vmem>>, %arg7: memref<32x32xbf16, #tpu.memory_space<vmem>>, %arg8: memref<1x32xf32, #tpu.memory_space<vmem>>, %arg9: memref<32x32xbf16, #tpu.memory_space<vmem>>, %arg10: memref<1x32xf32, #tpu.memory_space<vmem>>, %arg11: memref<1x32xf32, #tpu.memory_space<vmem>>, %arg12: memref<1x32xf32, #tpu.memory_space<vmem>>, %arg13: memref<32x128xbf16, #tpu.memory_space<vmem>>, %arg14: memref<1x128xf32, #tpu.memory_space<vmem>>, %arg15: memref<128x32xbf16, #tpu.memory_space<vmem>>, %arg16: memref<1x32xf32, #tpu.memory_space<vmem>>, %arg17: memref<1x32xf32, #tpu.memory_space<vmem>>, %arg18: memref<1x32xf32, #tpu.memory_space<vmem>>, %arg19: memref<1x8x32xf32, #tpu.memory_space<vmem>>) attributes {dimension_semantics = [#tpu.dimension_semantics<parallel>], iteration_bounds = array<i64: 2>, scalar_prefetch = 0 : i64, scratch_operands = 0 : i64, tpu.core_type = #tpu.core_type<tc>, window_params = [{transform_indices = @transform_0, window_bounds = array<i64: 1, 8, 32>}, {transform_indices = @transform_1, window_bounds = array<i64: 1, 1, 8>}, {pipeline_mode = #tpu.pipeline_mode<synchronous>, transform_indices = @transform_2, window_bounds = array<i64: 32, 32>}, {pipeline_mode = #tpu.pipeline_mode<synchronous>, transform_indices = @transform_3, window_bounds = array<i64: 1, 32>}, {pipeline_mode = #tpu.pipeline_mode<synchronous>, transform_indices = @transform_4, window_bounds = array<i64: 32, 32>}, {pipeline_mode = #tpu.pipeline_mode<synchronous>, transform_indices = @transform_5, window_bounds = array<i64: 1, 32>}, {pipeline_mode = #tpu.pipeline_mode<synchronous>, transform_indices = @transform_6, window_bounds = array<i64: 32, 32>}, {pipeline_mode = #tpu.pipeline_mode<synchronous>, transform_indices = @transform_7, window_bounds = array<i64: 1, 32>}, {pipeline_mode = #tpu.pipeline_mode<synchronous>, transform_indices = @transform_8, window_bounds = array<i64: 32, 32>}, {pipeline_mode = #tpu.pipeline_mode<synchronous>, transform_indices = @transform_9, window_bounds = array<i64: 1, 32>}, {pipeline_mode = #tpu.pipeline_mode<synchronous>, transform_indices = @transform_10, window_bounds = array<i64: 1, 32>}, {pipeline_mode = #tpu.pipeline_mode<synchronous>, transform_indices = @transform_11, window_bounds = array<i64: 1, 32>}, {pipeline_mode = #tpu.pipeline_mode<synchronous>, transform_indices = @transform_12, window_bounds = array<i64: 32, 128>}, {pipeline_mode = #tpu.pipeline_mode<synchronous>, transform_indices = @transform_13, window_bounds = array<i64: 1, 128>}, {pipeline_mode = #tpu.pipeline_mode<synchronous>, transform_indices = @transform_14, window_bounds = array<i64: 128, 32>}, {pipeline_mode = #tpu.pipeline_mode<synchronous>, transform_indices = @transform_15, window_bounds = array<i64: 1, 32>}, {pipeline_mode = #tpu.pipeline_mode<synchronous>, transform_indices = @transform_16, window_bounds = array<i64: 1, 32>}, {pipeline_mode = #tpu.pipeline_mode<synchronous>, transform_indices = @transform_17, window_bounds = array<i64: 1, 32>}, {transform_indices = @transform_18, window_bounds = array<i64: 1, 8, 32>}]} {
    %c0 = arith.constant 0 : index
    %c0_0 = arith.constant 0 : index
    %c0_1 = arith.constant 0 : index
    %0 = vector.load %arg1[%c0, %c0_0, %c0_1] : memref<1x8x32xf32, #tpu.memory_space<vmem>>, vector<1x8x32xf32>
    %1 = vector.shape_cast %0 : vector<1x8x32xf32> to vector<8x32xf32>
    %c0_2 = arith.constant 0 : index
    %c0_3 = arith.constant 0 : index
    %c0_4 = arith.constant 0 : index
    %2 = vector.load %arg2[%c0_2, %c0_3, %c0_4] : memref<1x1x8xf32, #tpu.memory_space<vmem>>, vector<1x1x8xf32>
    %3 = vector.shape_cast %2 : vector<1x1x8xf32> to vector<1x8xf32>
    %4 = arith.truncf %1 : vector<8x32xf32> to vector<8x32xbf16>
    %c0_5 = arith.constant 0 : index
    %c0_6 = arith.constant 0 : index
    %5 = vector.load %arg3[%c0_5, %c0_6] : memref<32x32xbf16, #tpu.memory_space<vmem>>, vector<32x32xbf16>
    %cst = arith.constant dense<0.000000e+00> : vector<8x32xf32>
    %6 = tpu.matmul %4, %5, %cst {dimension_numbers = #tpu.dot_dimension_numbers<[1], [0], [0], [1], [0, 0, 1, 1], [], []>} : vector<8x32xbf16>, vector<32x32xbf16>, vector<8x32xf32> -> vector<8x32xf32>
    %c0_7 = arith.constant 0 : index
    %c0_8 = arith.constant 0 : index
    %7 = vector.load %arg4[%c0_7, %c0_8] : memref<1x32xf32, #tpu.memory_space<vmem>>, vector<1x32xf32>
    %8 = vector.broadcast %7 : vector<1x32xf32> to vector<8x32xf32>
    %9 = arith.addf %6, %8 : vector<8x32xf32>
    %c0_9 = arith.constant 0 : index
    %c0_10 = arith.constant 0 : index
    %10 = vector.load %arg5[%c0_9, %c0_10] : memref<32x32xbf16, #tpu.memory_space<vmem>>, vector<32x32xbf16>
    %cst_11 = arith.constant dense<0.000000e+00> : vector<8x32xf32>
    %11 = tpu.matmul %4, %10, %cst_11 {dimension_numbers = #tpu.dot_dimension_numbers<[1], [0], [0], [1], [0, 0, 1, 1], [], []>} : vector<8x32xbf16>, vector<32x32xbf16>, vector<8x32xf32> -> vector<8x32xf32>
    %c0_12 = arith.constant 0 : index
    %c0_13 = arith.constant 0 : index
    %12 = vector.load %arg6[%c0_12, %c0_13] : memref<1x32xf32, #tpu.memory_space<vmem>>, vector<1x32xf32>
    %13 = vector.broadcast %12 : vector<1x32xf32> to vector<8x32xf32>
    %14 = arith.addf %11, %13 : vector<8x32xf32>
    %c0_14 = arith.constant 0 : index
    %c0_15 = arith.constant 0 : index
    %15 = vector.load %arg7[%c0_14, %c0_15] : memref<32x32xbf16, #tpu.memory_space<vmem>>, vector<32x32xbf16>
    %cst_16 = arith.constant dense<0.000000e+00> : vector<8x32xf32>
    %16 = tpu.matmul %4, %15, %cst_16 {dimension_numbers = #tpu.dot_dimension_numbers<[1], [0], [0], [1], [0, 0, 1, 1], [], []>} : vector<8x32xbf16>, vector<32x32xbf16>, vector<8x32xf32> -> vector<8x32xf32>
    %c0_17 = arith.constant 0 : index
    %c0_18 = arith.constant 0 : index
    %17 = vector.load %arg8[%c0_17, %c0_18] : memref<1x32xf32, #tpu.memory_space<vmem>>, vector<1x32xf32>
    %18 = vector.broadcast %17 : vector<1x32xf32> to vector<8x32xf32>
    %19 = arith.addf %16, %18 : vector<8x32xf32>
    %cst_19 = arith.constant 0.353553385 : f32
    %20 = vector.broadcast %cst_19 : f32 to vector<8x32xf32>
    %21 = arith.mulf %9, %20 : vector<8x32xf32>
    %22 = vector.shape_cast %21 : vector<8x32xf32> to vector<8x4x8xf32>
    %23 = tpu.transpose %22, [1, 0, 2] : vector<8x4x8xf32> -> vector<4x8x8xf32>
    %24 = arith.truncf %23 : vector<4x8x8xf32> to vector<4x8x8xbf16>
    %25 = vector.shape_cast %14 : vector<8x32xf32> to vector<8x4x8xf32>
    %26 = tpu.transpose %25, [1, 0, 2] : vector<8x4x8xf32> -> vector<4x8x8xf32>
    %27 = arith.truncf %26 : vector<4x8x8xf32> to vector<4x8x8xbf16>
    %28 = vector.shape_cast %19 : vector<8x32xf32> to vector<8x4x8xf32>
    %29 = tpu.transpose %28, [1, 0, 2] : vector<8x4x8xf32> -> vector<4x8x8xf32>
    %30 = arith.truncf %29 : vector<4x8x8xf32> to vector<4x8x8xbf16>
    "tpu.trace_start"() <{level = 10 : i32, message = "hqd,hkd->hqk"}> : () -> ()
    %cst_20 = arith.constant dense<0.000000e+00> : vector<4x8x8xf32>
    %31 = tpu.matmul %24, %27, %cst_20 {dimension_numbers = #tpu.dot_dimension_numbers<[2], [2], [1], [1], [0, 0, 0, 1, 1, 1], [0], [0]>} : vector<4x8x8xbf16>, vector<4x8x8xbf16>, vector<4x8x8xf32> -> vector<4x8x8xf32>
    "tpu.trace_stop"() : () -> ()
    %32 = tpu.transpose %3, [1, 0] : vector<1x8xf32> -> vector<8x1xf32>
    %33 = vector.broadcast %32 : vector<8x1xf32> to vector<8x8xf32>
    %34 = vector.broadcast %3 : vector<1x8xf32> to vector<8x8xf32>
    %35 = arith.mulf %33, %34 : vector<8x8xf32>
    %cst_21 = arith.constant 0.000000e+00 : f32
    %36 = vector.broadcast %cst_21 : f32 to vector<8x8xf32>
    %37 = arith.cmpf oeq, %35, %36 : vector<8x8xf32>
    %38 = vector.shape_cast %37 : vector<8x8xi1> to vector<1x8x8xi1>
    %cst_22 = arith.constant -1.000000e+09 : f32
    %39 = vector.shape_cast %38 : vector<1x8x8xi1> to vector<1x8x8xi1>
    %40 = vector.broadcast %39 : vector<1x8x8xi1> to vector<4x8x8xi1>
    %41 = vector.broadcast %cst_22 : f32 to vector<4x8x8xf32>
    %42 = arith.select %40, %41, %31 : vector<4x8x8xi1>, vector<4x8x8xf32>
    %cst_23 = arith.constant dense<0xFF800000> : vector<4x8xf32>
    %43 = vector.multi_reduction <maximumf>, %42, %cst_23 [2] : vector<4x8x8xf32> to vector<4x8xf32>
    %44 = vector.shape_cast %43 : vector<4x8xf32> to vector<4x8x1xf32>
    %45 = vector.broadcast %44 : vector<4x8x1xf32> to vector<4x8x8xf32>
    %46 = arith.subf %42, %45 : vector<4x8x8xf32>
    %47 = math.exp %46 : vector<4x8x8xf32>
    %cst_24 = arith.constant dense<0.000000e+00> : vector<4x8xf32>
    %48 = vector.multi_reduction <add>, %47, %cst_24 [2] : vector<4x8x8xf32> to vector<4x8xf32>
    %49 = vector.shape_cast %48 : vector<4x8xf32> to vector<4x8x1xf32>
    %50 = tpu.reciprocal %49 {approx = true} : vector<4x8x1xf32> -> vector<4x8x1xf32>
    %51 = vector.broadcast %50 : vector<4x8x1xf32> to vector<4x8x8xf32>
    %52 = arith.mulf %47, %51 : vector<4x8x8xf32>
    %53 = arith.truncf %52 : vector<4x8x8xf32> to vector<4x8x8xbf16>
    "tpu.trace_start"() <{level = 10 : i32, message = "hqk,hkd->hqd"}> : () -> ()
    %cst_25 = arith.constant dense<0.000000e+00> : vector<4x8x8xf32>
    %54 = tpu.matmul %53, %30, %cst_25 {dimension_numbers = #tpu.dot_dimension_numbers<[2], [1], [1], [2], [0, 0, 0, 1, 1, 2], [0], [0]>} : vector<4x8x8xbf16>, vector<4x8x8xbf16>, vector<4x8x8xf32> -> vector<4x8x8xf32>
    "tpu.trace_stop"() : () -> ()
    %55 = tpu.transpose %54, [1, 0, 2] : vector<4x8x8xf32> -> vector<8x4x8xf32>
    %56 = vector.shape_cast %55 : vector<8x4x8xf32> to vector<8x32xf32>
    %57 = arith.truncf %56 : vector<8x32xf32> to vector<8x32xbf16>
    %c0_26 = arith.constant 0 : index
    %c0_27 = arith.constant 0 : index
    %58 = vector.load %arg9[%c0_26, %c0_27] : memref<32x32xbf16, #tpu.memory_space<vmem>>, vector<32x32xbf16>
    %cst_28 = arith.constant dense<0.000000e+00> : vector<8x32xf32>
    %59 = tpu.matmul %57, %58, %cst_28 {dimension_numbers = #tpu.dot_dimension_numbers<[1], [0], [0], [1], [0, 0, 1, 1], [], []>} : vector<8x32xbf16>, vector<32x32xbf16>, vector<8x32xf32> -> vector<8x32xf32>
    %c0_29 = arith.constant 0 : index
    %c0_30 = arith.constant 0 : index
    %60 = vector.load %arg10[%c0_29, %c0_30] : memref<1x32xf32, #tpu.memory_space<vmem>>, vector<1x32xf32>
    %61 = vector.broadcast %60 : vector<1x32xf32> to vector<8x32xf32>
    %62 = arith.addf %59, %61 : vector<8x32xf32>
    %63 = arith.addf %62, %1 : vector<8x32xf32>
    %c0_31 = arith.constant 0 : index
    %c0_32 = arith.constant 0 : index
    %64 = vector.load %arg11[%c0_31, %c0_32] : memref<1x32xf32, #tpu.memory_space<vmem>>, vector<1x32xf32>
    %c0_33 = arith.constant 0 : index
    %c0_34 = arith.constant 0 : index
    %65 = vector.load %arg12[%c0_33, %c0_34] : memref<1x32xf32, #tpu.memory_space<vmem>>, vector<1x32xf32>
    %cst_35 = arith.constant dense<0.000000e+00> : vector<8xf32>
    %66 = vector.multi_reduction <add>, %63, %cst_35 [1] : vector<8x32xf32> to vector<8xf32>
    %67 = vector.shape_cast %66 : vector<8xf32> to vector<8x1xf32>
    %cst_36 = arith.constant 3.200000e+01 : f32
    %68 = vector.broadcast %cst_36 : f32 to vector<8x1xf32>
    %69 = arith.divf %67, %68 : vector<8x1xf32>
    %70 = vector.broadcast %69 : vector<8x1xf32> to vector<8x32xf32>
    %71 = arith.subf %63, %70 : vector<8x32xf32>
    %72 = arith.mulf %71, %71 : vector<8x32xf32>
    %cst_37 = arith.constant dense<0.000000e+00> : vector<8xf32>
    %73 = vector.multi_reduction <add>, %72, %cst_37 [1] : vector<8x32xf32> to vector<8xf32>
    %74 = vector.shape_cast %73 : vector<8xf32> to vector<8x1xf32>
    %cst_38 = arith.constant 3.200000e+01 : f32
    %75 = vector.broadcast %cst_38 : f32 to vector<8x1xf32>
    %76 = arith.divf %74, %75 : vector<8x1xf32>
    %77 = vector.broadcast %69 : vector<8x1xf32> to vector<8x32xf32>
    %78 = arith.subf %63, %77 : vector<8x32xf32>
    %cst_39 = arith.constant 9.99999974E-6 : f32
    %79 = vector.broadcast %cst_39 : f32 to vector<8x1xf32>
    %80 = arith.addf %76, %79 : vector<8x1xf32>
    %81 = math.rsqrt %80 : vector<8x1xf32>
    %82 = vector.broadcast %81 : vector<8x1xf32> to vector<8x32xf32>
    %83 = arith.mulf %78, %82 : vector<8x32xf32>
    %84 = vector.broadcast %64 : vector<1x32xf32> to vector<8x32xf32>
    %85 = arith.mulf %83, %84 : vector<8x32xf32>
    %86 = vector.broadcast %65 : vector<1x32xf32> to vector<8x32xf32>
    %87 = arith.addf %85, %86 : vector<8x32xf32>
    %88 = arith.truncf %87 : vector<8x32xf32> to vector<8x32xbf16>
    %c0_40 = arith.constant 0 : index
    %c0_41 = arith.constant 0 : index
    %89 = vector.load %arg13[%c0_40, %c0_41] : memref<32x128xbf16, #tpu.memory_space<vmem>>, vector<32x128xbf16>
    %cst_42 = arith.constant dense<0.000000e+00> : vector<8x128xf32>
    %90 = tpu.matmul %88, %89, %cst_42 {dimension_numbers = #tpu.dot_dimension_numbers<[1], [0], [0], [1], [0, 0, 1, 1], [], []>} : vector<8x32xbf16>, vector<32x128xbf16>, vector<8x128xf32> -> vector<8x128xf32>
    %c0_43 = arith.constant 0 : index
    %c0_44 = arith.constant 0 : index
    %91 = vector.load %arg14[%c0_43, %c0_44] : memref<1x128xf32, #tpu.memory_space<vmem>>, vector<1x128xf32>
    %92 = vector.broadcast %91 : vector<1x128xf32> to vector<8x128xf32>
    %93 = arith.addf %90, %92 : vector<8x128xf32>
    %cst_45 = arith.constant 5.000000e-01 : f32
    %94 = vector.broadcast %cst_45 : f32 to vector<8x128xf32>
    %95 = arith.mulf %94, %93 : vector<8x128xf32>
    %cst_46 = arith.constant 4.471500e-02 : f32
    %96 = vector.broadcast %cst_46 : f32 to vector<8x128xf32>
    %97 = arith.mulf %96, %93 : vector<8x128xf32>
    %98 = arith.mulf %97, %93 : vector<8x128xf32>
    %99 = arith.mulf %98, %93 : vector<8x128xf32>
    %100 = arith.addf %93, %99 : vector<8x128xf32>
    %cst_47 = arith.constant 0.797884583 : f32
    %101 = vector.broadcast %cst_47 : f32 to vector<8x128xf32>
    %102 = arith.mulf %101, %100 : vector<8x128xf32>
    %103 = math.tanh %102 : vector<8x128xf32>
    %cst_48 = arith.constant 1.000000e+00 : f32
    %104 = vector.broadcast %cst_48 : f32 to vector<8x128xf32>
    %105 = arith.addf %104, %103 : vector<8x128xf32>
    %106 = arith.mulf %95, %105 : vector<8x128xf32>
    %107 = arith.truncf %106 : vector<8x128xf32> to vector<8x128xbf16>
    %c0_49 = arith.constant 0 : index
    %c0_50 = arith.constant 0 : index
    %108 = vector.load %arg15[%c0_49, %c0_50] : memref<128x32xbf16, #tpu.memory_space<vmem>>, vector<128x32xbf16>
    %cst_51 = arith.constant dense<0.000000e+00> : vector<8x32xf32>
    %109 = tpu.matmul %107, %108, %cst_51 {dimension_numbers = #tpu.dot_dimension_numbers<[1], [0], [0], [1], [0, 0, 1, 1], [], []>} : vector<8x128xbf16>, vector<128x32xbf16>, vector<8x32xf32> -> vector<8x32xf32>
    %c0_52 = arith.constant 0 : index
    %c0_53 = arith.constant 0 : index
    %110 = vector.load %arg16[%c0_52, %c0_53] : memref<1x32xf32, #tpu.memory_space<vmem>>, vector<1x32xf32>
    %111 = vector.broadcast %110 : vector<1x32xf32> to vector<8x32xf32>
    %112 = arith.addf %109, %111 : vector<8x32xf32>
    %113 = arith.addf %112, %87 : vector<8x32xf32>
    %c0_54 = arith.constant 0 : index
    %c0_55 = arith.constant 0 : index
    %114 = vector.load %arg17[%c0_54, %c0_55] : memref<1x32xf32, #tpu.memory_space<vmem>>, vector<1x32xf32>
    %c0_56 = arith.constant 0 : index
    %c0_57 = arith.constant 0 : index
    %115 = vector.load %arg18[%c0_56, %c0_57] : memref<1x32xf32, #tpu.memory_space<vmem>>, vector<1x32xf32>
    %cst_58 = arith.constant dense<0.000000e+00> : vector<8xf32>
    %116 = vector.multi_reduction <add>, %113, %cst_58 [1] : vector<8x32xf32> to vector<8xf32>
    %117 = vector.shape_cast %116 : vector<8xf32> to vector<8x1xf32>
    %cst_59 = arith.constant 3.200000e+01 : f32
    %118 = vector.broadcast %cst_59 : f32 to vector<8x1xf32>
    %119 = arith.divf %117, %118 : vector<8x1xf32>
    %120 = vector.broadcast %119 : vector<8x1xf32> to vector<8x32xf32>
    %121 = arith.subf %113, %120 : vector<8x32xf32>
    %122 = arith.mulf %121, %121 : vector<8x32xf32>
    %cst_60 = arith.constant dense<0.000000e+00> : vector<8xf32>
    %123 = vector.multi_reduction <add>, %122, %cst_60 [1] : vector<8x32xf32> to vector<8xf32>
    %124 = vector.shape_cast %123 : vector<8xf32> to vector<8x1xf32>
    %cst_61 = arith.constant 3.200000e+01 : f32
    %125 = vector.broadcast %cst_61 : f32 to vector<8x1xf32>
    %126 = arith.divf %124, %125 : vector<8x1xf32>
    %127 = vector.broadcast %119 : vector<8x1xf32> to vector<8x32xf32>
    %128 = arith.subf %113, %127 : vector<8x32xf32>
    %cst_62 = arith.constant 9.99999974E-6 : f32
    %129 = vector.broadcast %cst_62 : f32 to vector<8x1xf32>
    %130 = arith.addf %126, %129 : vector<8x1xf32>
    %131 = math.rsqrt %130 : vector<8x1xf32>
    %132 = vector.broadcast %131 : vector<8x1xf32> to vector<8x32xf32>
    %133 = arith.mulf %128, %132 : vector<8x32xf32>
    %134 = vector.broadcast %114 : vector<1x32xf32> to vector<8x32xf32>
    %135 = arith.mulf %133, %134 : vector<8x32xf32>
    %136 = vector.broadcast %115 : vector<1x32xf32> to vector<8x32xf32>
    %137 = arith.addf %135, %136 : vector<8x32xf32>
    %c0_63 = arith.constant 0 : index
    %c0_64 = arith.constant 0 : index
    %c0_65 = arith.constant 0 : index
    %138 = vector.load %arg19[%c0_63, %c0_64, %c0_65] : memref<1x8x32xf32, #tpu.memory_space<vmem>>, vector<1x8x32xf32>
    %139 = vector.shape_cast %138 : vector<1x8x32xf32> to vector<8x32xf32>
    %140 = vector.shape_cast %137 : vector<8x32xf32> to vector<1x8x32xf32>
    tpu.vector_store %arg19[%c0_63, %c0_64, %c0_65], %140 {strides = array<i32>} : memref<1x8x32xf32, #tpu.memory_space<vmem>>, vector<1x8x32xf32>,
    return
  }
  func.func @transform_0(%arg0: i32) -> (i32, i32, i32) {
    %c0_i32 = arith.constant 0 : i32
    %c0_i32_0 = arith.constant 0 : i32
    %c0_i32_1 = arith.constant 0 : i32
    return %arg0, %c0_i32, %c0_i32_0 : i32, i32, i32
  }
  func.func @transform_1(%arg0: i32) -> (i32, i32, i32) {
    %c0_i32 = arith.constant 0 : i32
    %c0_i32_0 = arith.constant 0 : i32
    %c0_i32_1 = arith.constant 0 : i32
    return %arg0, %c0_i32, %c0_i32_0 : i32, i32, i32
  }
  func.func @transform_2(%arg0: i32) -> (i32, i32) {
    %c0_i32 = arith.constant 0 : i32
    %c0_i32_0 = arith.constant 0 : i32
    %c0_i32_1 = arith.constant 0 : i32
    return %c0_i32, %c0_i32_0 : i32, i32
  }
  func.func @transform_3(%arg0: i32) -> (i32, i32) {
    %c0_i32 = arith.constant 0 : i32
    %c0_i32_0 = arith.constant 0 : i32
    %c0_i32_1 = arith.constant 0 : i32
    return %c0_i32, %c0_i32_0 : i32, i32
  }
  func.func @transform_4(%arg0: i32) -> (i32, i32) {
    %c0_i32 = arith.constant 0 : i32
    %c0_i32_0 = arith.constant 0 : i32
    %c0_i32_1 = arith.constant 0 : i32
    return %c0_i32, %c0_i32_0 : i32, i32
  }
  func.func @transform_5(%arg0: i32) -> (i32, i32) {
    %c0_i32 = arith.constant 0 : i32
    %c0_i32_0 = arith.constant 0 : i32
    %c0_i32_1 = arith.constant 0 : i32
    return %c0_i32, %c0_i32_0 : i32, i32
  }
  func.func @transform_6(%arg0: i32) -> (i32, i32) {
    %c0_i32 = arith.constant 0 : i32
    %c0_i32_0 = arith.constant 0 : i32
    %c0_i32_1 = arith.constant 0 : i32
    return %c0_i32, %c0_i32_0 : i32, i32
  }
  func.func @transform_7(%arg0: i32) -> (i32, i32) {
    %c0_i32 = arith.constant 0 : i32
    %c0_i32_0 = arith.constant 0 : i32
    %c0_i32_1 = arith.constant 0 : i32
    return %c0_i32, %c0_i32_0 : i32, i32
  }
  func.func @transform_8(%arg0: i32) -> (i32, i32) {
    %c0_i32 = arith.constant 0 : i32
    %c0_i32_0 = arith.constant 0 : i32
    %c0_i32_1 = arith.constant 0 : i32
    return %c0_i32, %c0_i32_0 : i32, i32
  }
  func.func @transform_9(%arg0: i32) -> (i32, i32) {
    %c0_i32 = arith.constant 0 : i32
    %c0_i32_0 = arith.constant 0 : i32
    %c0_i32_1 = arith.constant 0 : i32
    return %c0_i32, %c0_i32_0 : i32, i32
  }
  func.func @transform_10(%arg0: i32) -> (i32, i32) {
    %c0_i32 = arith.constant 0 : i32
    %c0_i32_0 = arith.constant 0 : i32
    %c0_i32_1 = arith.constant 0 : i32
    return %c0_i32, %c0_i32_0 : i32, i32
  }
  func.func @transform_11(%arg0: i32) -> (i32, i32) {
    %c0_i32 = arith.constant 0 : i32
    %c0_i32_0 = arith.constant 0 : i32
    %c0_i32_1 = arith.constant 0 : i32
    return %c0_i32, %c0_i32_0 : i32, i32
  }
  func.func @transform_12(%arg0: i32) -> (i32, i32) {
    %c0_i32 = arith.constant 0 : i32
    %c0_i32_0 = arith.constant 0 : i32
    %c0_i32_1 = arith.constant 0 : i32
    return %c0_i32, %c0_i32_0 : i32, i32
  }
  func.func @transform_13(%arg0: i32) -> (i32, i32) {
    %c0_i32 = arith.constant 0 : i32
    %c0_i32_0 = arith.constant 0 : i32
    %c0_i32_1 = arith.constant 0 : i32
    return %c0_i32, %c0_i32_0 : i32, i32
  }
  func.func @transform_14(%arg0: i32) -> (i32, i32) {
    %c0_i32 = arith.constant 0 : i32
    %c0_i32_0 = arith.constant 0 : i32
    %c0_i32_1 = arith.constant 0 : i32
    return %c0_i32, %c0_i32_0 : i32, i32
  }
  func.func @transform_15(%arg0: i32) -> (i32, i32) {
    %c0_i32 = arith.constant 0 : i32
    %c0_i32_0 = arith.constant 0 : i32
    %c0_i32_1 = arith.constant 0 : i32
    return %c0_i32, %c0_i32_0 : i32, i32
  }
  func.func @transform_16(%arg0: i32) -> (i32, i32) {
    %c0_i32 = arith.constant 0 : i32
    %c0_i32_0 = arith.constant 0 : i32
    %c0_i32_1 = arith.constant 0 : i32
    return %c0_i32, %c0_i32_0 : i32, i32
  }
  func.func @transform_17(%arg0: i32) -> (i32, i32) {
    %c0_i32 = arith.constant 0 : i32
    %c0_i32_0 = arith.constant 0 : i32
    %c0_i32_1 = arith.constant 0 : i32
    return %c0_i32, %c0_i32_0 : i32, i32
  }
  func.func @transform_18(%arg0: i32) -> (i32, i32, i32) {
    %c0_i32 = arith.constant 0 : i32
    %c0_i32_0 = arith.constant 0 : i32
    %c0_i32_1 = arith.constant 0 : i32
    return %arg0, %c0_i32, %c0_i32_0 : i32, i32, i32
  }
}

</mosaic_0001>

<bundles_post_ra>
// kernel: tpu_custom_call.1
= control target key start
LH: loop header
LB: loop body
LE: loop exit
PB: predicated region body
PF: predicated region fallthrough
CT: control target
= control target key end

     0   :  { %s3307_s0 = inlined_call_operand.vmem [shape: f32[2,8,32], index: 0, kind: input, shape index: {}]   ;;  %s3308_s1 = inlined_call_operand.hbm [shape: f32[2,1,8], index: 1, kind: input, shape index: {}]   ;;  %s3309_s2 = inlined_call_operand.vmem [shape: bf16[32,32], index: 2, kind: input, shape index: {}]   ;;  %s3310_s3 = inlined_call_operand.vmem [shape: f32[1,32], index: 3, kind: input, shape index: {}]   ;;  %s3311_s4 = inlined_call_operand.vmem [shape: bf16[32,32], index: 4, kind: input, shape index: {}]   ;;  %s3312_s5 = inlined_call_operand.vmem [shape: f32[1,32], index: 5, kind: input, shape index: {}]   ;;  %s3313_s6 = inlined_call_operand.vmem [shape: bf16[32,32], index: 6, kind: input, shape index: {}]   ;;  %s3314_s7 = inlined_call_operand.vmem [shape: f32[1,32], index: 7, kind: input, shape index: {}]   ;;  %s3315_s8 = inlined_call_operand.vmem [shape: bf16[32,32], index: 8, kind: input, shape index: {}]   ;;  %s3316_s9 = inlined_call_operand.vmem [shape: f32[1,32], index: 9, kind: input, shape index: {}]   ;;  %s3317_s10 = inlined_call_operand.vmem [shape: f32[1,32], index: 10, kind: input, shape index: {}]   ;;  %s3318_s11 = inlined_call_operand.vmem [shape: f32[1,32], index: 11, kind: input, shape index: {}]   ;;  %s3319_s12 = inlined_call_operand.hbm [shape: bf16[32,128], index: 12, kind: input, shape index: {}]   ;;  %s3320_s13 = inlined_call_operand.vmem [shape: f32[1,128], index: 13, kind: input, shape index: {}]   ;;  %s3321_s14 = inlined_call_operand.vmem [shape: bf16[128,32], index: 14, kind: input, shape index: {}]   ;;  %s3322_s15 = inlined_call_operand.vmem [shape: f32[1,32], index: 15, kind: input, shape index: {}]   ;;  %s3323_s16 = inlined_call_operand.vmem [shape: f32[1,32], index: 16, kind: input, shape index: {}]   ;;  %s3324_s17 = inlined_call_operand.vmem [shape: f32[1,32], index: 17, kind: input, shape index: {}]   ;;  %s3325_s18 = inlined_call_operand.hbm [shape: f32[2,8,32], index: 18, kind: output, shape index: {}]  }
   0x1   :  { %3338 = sst [smem:[#allocation15_spill]] %s3307_s0 }
   0x2   :  { %3339 = sst [smem:[#allocation16_spill]] %s3308_s1 }
   0x3   :  { %3340 = sst [smem:[#allocation17_spill]] %s3309_s2 }
   0x4   :  { %3341 = sst [smem:[#allocation18_spill]] %s3310_s3 }
   0x5   :  { %3342 = sst [smem:[#allocation19_spill]] %s3311_s4 }
   0x6   :  { %3343 = sst [smem:[#allocation20_spill]] %s3319_s12 }
   0x7   :  { %3344 = sst [smem:[#allocation21_spill]] %s3320_s13 }
   0x8   :  { %3345 = sst [smem:[#allocation22_spill]] %s3321_s14 }
   0x9   :  { %3346 = sst [smem:[#allocation23_spill]] %s3322_s15 }
   0xa   :  { %3347 = sst [smem:[#allocation24_spill]] %s3323_s16 }
   0xb   :  { %3348 = sst [smem:[#allocation25_spill]] %s3324_s17 }
   0xc   :  { %3349 = sst [smem:[#allocation26_spill]] %s3325_s18 }
   0xd   :  { %23 = vsyncpa [#allocation3], 0 }
   0xe   :  { %25 = vsyncpa [#allocation3 + $0x1], 0 }
   0xf   :  { %26 = vsyncpa [#allocation6], 0 }
  0x10   :  { %27 = vsyncpa [#allocation4], 0 }
  0x11   :  { %29 = vsyncpa [#allocation4 + $0x1], 0  ;;  %s2867_s27 = smov 0   ;;  %s2869_s28 = smov 0  }
  0x12   :  { %s2871_s29 = smov 0   ;;  %s2873_s30 = smov 0  }
  0x13 LB: > { %3350 = sst [smem:[#allocation11_spill]] %s2742_s27  ;;  %s2888_s0 = sadd.s32 4294967295, %s2754_s30   ;;  %s2754_s30 = sphi %s2873_s30, %s3382_s30   ;;  %s2750_s29 = sphi %s2871_s29, %s3386_s29   ;;  %s2746_s28 = sphi %s2869_s28, %s3385_s28   ;;  %s2742_s27 = sphi %s2867_s27, %s3384_s27  }
  0x14   : > { %s2310_s19 = sadd.s32 4294967294, %s2754_s30   ;;  %p81_p0 = scmp.ne.s32.totalorder %s2746_s28, %s2742_s27 }
  0x15   : > { %p3334_p1 = scmp.eq.s32.totalorder %s2888_s0, 0  ;;  %p447_p3 = scmp.eq.s32.totalorder %s2310_s19, 1 }
  0x16   : > { %p2311_p5 = scmp.ge.s32.totalorder %s2754_s30, 1  ;;  %p454_p7 = scmp.lt.s32.totalorder %s2754_s30, 3 }
  0x17   : > { %p2897_p4 = por %p3334_p1, %p81_p0  ;;  %p2902_p6 = por %p447_p3, %p81_p0 }
  0x18   : > { %p2907_p8 = pnand %p2311_p5, %p454_p7  ;;  %s2756_s22 = smov [#allocation5]  }
  0x19   : > { %s3351_s1 = scalar_select %p2897_p4, 1, 0 }
  0x1a   : > { %s3352_s20 = scalar_select %p2902_p6, 1, 0 }
  0x1b   : > { %s3354_s21 = scalar_select %p2907_p8, 1, 0 }
  0x1c   : > { %3353 = sst [smem:[#allocation12_spill]] %s3352_s20  ;;  %s496_s2 = sshll.u32 %s2756_s22, 4  ;;  %s497_s2 = int_to_ptr.vmem [resolvable:$true] %s496_s2 }
  0x1d   : > { %p2528_p9 = pneg %p2907_p8  ;;  %s2921_s24 = sadd.s32 1, %s2754_s30  }
  0x1e   : > { %3356 = sst [smem:[#allocation13_spill]] %s2921_s24  ;;  %s68_s25 = sadd.s32 1, %s2750_s29 }
  0x1f   : > { %p2916_p11 = pnand %p2528_p9, %p3334_p1  ;;  %s65_s26 = ssub.s32 %s2754_s30, %s2921_s24 }
  0x20   : > { %s2643_s19 = scalar_lea.vmem %s497_s2, 256  ;;  %p2651_p5 = scmp.lt.s32.totalorder %s497_s2, %s497_s2 }
  0x21   : > { %p2634_p12 = pneg %p2916_p11  ;;  %p2644_p13 = scmp.ne.s32.totalorder %s497_s2, %s2643_s19 }
  0x22   : > { %p2652_p7 = scmp.lt.s32.totalorder %s2643_s19, %s2643_s19 }
  0x23   : > { %p2646_p0 = pnand %p2644_p13, %p2634_p12 }
  0x24   : > { %p2653_p10 = por %p2652_p7, %p2651_p5 }
  0x25   : > { %p2647_p3 = pneg %p2646_p0 }
  0x27   : > { %p2654_p2 = pnand %p2653_p10, %p2647_p3 }
  0x29   : > { %2657 = shalt.err (!%p2654_p2)
}
  0x2a   : > { %s2757_s22 = smov 64   ;;  %s2758_s24 = smov 4  }
  0x2b   : > { %s3357_s12 = sld [smem:[#allocation20_spill]]  ;;  %p66_p9 = scmp.eq.s32.totalorder %s65_s26, 0 }
  0x2c   : > { %p75_p12 = scmp.ne.s32.totalorder %s2750_s29, %s2746_s28  ;;  %p76_p10 = scmp.eq.s32.totalorder %s2754_s30, 0 }
  0x2d   : > { %p2541_p2 = scmp.lt.s32.totalorder %s2754_s30, 2  ;;  %p3359_p0 = scmp.eq.s32.totalorder %s2888_s0, 1 }
  0x2e   : > { %s2938_s19 = scalar_select %p66_p9, %s2750_s29, %s68_s25  }
  0x2f   : > { %p77_p13 = por %p76_p10, %p75_p12  ;;  %p2942_p3 = por %p3359_p0, %p75_p12 }
  0x30   : > { %3358 = sst [smem:[#allocation14_spill]] %s2938_s19  ;;  %s532_s17 = sand.u32 1, %s2750_s29  }
  0x31   : > { %2531 = dma.hbm_to_vmem [thread:$0]  (!%p2916_p11), %s3357_s12, 256, %s497_s2, [#allocation6], %s2757_s22, %s2757_s22, %s2758_s24  }
  0x32   : > { %s3360_s18 = scalar_select %p2942_p3, 1, 0 }
  0x33   : > { %s2314_s16 = sshll.u32 %s2754_s30, 4  ;;  %s3361_s13 = sld [smem:[#allocation16_spill]] }
  0x34   : > { %s535_s27 = scalar_lea.vmem [#allocation2], %s532_s17  ;;  %p2953_p11 = pnand %p2541_p2, %p77_p13 }
  0x35   : > { %s542_s20 = sshll.u32 %s535_s27, 4  ;;  %s533_s24 = scalar_lea.sflag [#allocation3], %s532_s17  ;;  %s543_s20 = int_to_ptr.vmem [resolvable:$true] %s542_s20 }
  0x36   : > { %p2660_p7 = pneg %p2953_p11 }
  0x39   : > { %s2951_s14 = scalar_lea.hbm %s3361_s13, %s2314_s16  ;;  %s2663_s26 = scalar_lea.hbm %s3361_s13, 32 }
  0x3a   : > { %s2658_s25 = scalar_lea.hbm %s2951_s14, 16  ;;  %p2664_p10 = scmp.lt.s32.totalorder %s2951_s14, %s3361_s13 }
  0x3b   : > { %p2659_p5 = scmp.ne.s32.totalorder %s2951_s14, %s2658_s25  ;;  %p2665_p2 = scmp.lt.s32.totalorder %s2663_s26, %s2658_s25 }
  0x3d   : > { %p2661_p9 = pnand %p2660_p7, %p2659_p5  ;;  %p2666_p13 = por %p2665_p2, %p2664_p10 }
  0x3f   : > { %p2662_p12 = pneg %p2661_p9 }
  0x41   : > { %p2667_p0 = pnand %p2666_p13, %p2662_p12 }
  0x43   : > { %2670 = shalt.err (!%p2667_p0)
}
  0x44   : > { %s2671_s27 = scalar_lea.vmem %s543_s20, 16  ;;  %s2759_s17 = smov [#allocation2]  }
  0x45   : > { %p2672_p1 = scmp.ne.s32.totalorder %s543_s20, %s2671_s27  ;;  %s2676_s12 = sshll.u32 %s2759_s17, 4  ;;  %s2677_s12 = int_to_ptr.vmem [resolvable:$false] %s2676_s12 }
  0x46   : > { %s2678_s19 = scalar_lea.vmem %s2677_s12, 32  ;;  %p2679_p5 = scmp.lt.s32.totalorder %s543_s20, %s2677_s12 }
  0x47   : > { %p2674_p6 = pnand %p2672_p1, %p2660_p7  ;;  %p2680_p9 = scmp.lt.s32.totalorder %s2678_s19, %s2671_s27 }
  0x49   : > { %p2675_p3 = pneg %p2674_p6  ;;  %p2681_p4 = por %p2680_p9, %p2679_p5 }
  0x4b   : > { %p2682_p8 = pnand %p2681_p4, %p2675_p3 }
  0x4d   : > { %2685 = shalt.err (!%p2682_p8)
}
  0x4e   : > { %2535 = dma.hbm_to_vmem [thread:$0]  (!%p2953_p11), %s2951_s14, 16, %s543_s20, %s533_s24  }
  0x4f   : > { %p3363_p12 = scmp.ne.s32.totalorder %s3354_s21, 0 }
  0x50   : > { %s2974_s25 = sand.u32 (!%p3363_p12), 1, %s2746_s28   ;;  %p3364_p1 = scmp.ne.s32.totalorder (!%p3363_p12), %s3351_s1, 0 }
  0x51   : > { %551 = sbr.rel (%p3363_p12) target bundleno = 2603 (0xa2b), region = 92  ;;  %s554_s15 = scalar_lea.sflag (!%p3363_p12), [#allocation3], %s2974_s25 }
  0x52   : > { %s556_s16 = scalar_lea.vmem (!%p3363_p12), [#allocation2], %s2974_s25 }
  0x56   : > { %2729 = dma.done.wait (%p3364_p1), %s554_s15, 16  }
  0x57   : > { %2731 = vsyncadd (%p3364_p1), %s554_s15, 4294967280  ;;  %p3365_p4 = scmp.eq.s32.totalorder %s2888_s0, 0 }
  0x59   : > { %2733 = dma.done.wait (%p3365_p4), [#allocation6], 256   ;;  %p3366_p6 = pmov %p3365_p4 }
  0x5a   : > { %p616_p8 = scmp.lt.s32.totalorder %s2888_s0, 1  ;;  %v2760_v0 = vmov 0.0   ;;  %vm2761_vm0 = vmmov 0   ;;  %s3367_s19 = sld [smem:[#allocation15_spill]]  ;;  %vm647_vm1 = vcmask 261120   ;;  %v2596_v18 = vld [vmem:[%s3313_s6 + $0x8] sm:$0xff]   ;;  %v833_v26 = vlaneseq }
  0x5b   : > { %2735 = vsyncadd (%p3366_p6), [#allocation6], 4294967040  ;;  %2412 = vmatprep.subr.bf16.mxu0 %v2760_v0  ;;  %2416 = vmatprep.mubr.msk.bf16.mxu0 %vm2761_vm0, %v2760_v0  ;;  %s3368_s26 = sld [smem:[#allocation17_spill]]  ;;  %v2323_v12 = vld [vmem:[%s3312_s5] ss:$0 sm:$0xff]  ;;  %s2763_s2 = smov 120  }
  0x5c   : > { %s617_s12 = scalar_select %p616_p8, %s2888_s0, 1  ;;  %2436 = vmatprep.subr.bf16.mxu1 %v2760_v0  ;;  %2438 = vmatprep.mubr.msk.bf16.mxu1 %vm2761_vm0, %v2760_v0  ;;  %v2597_v21 = vld [vmem:[%s3313_s6] sm:$0xff]   ;;  %v2765_v22 = vmov 0   ;;  %v2766_v24 = vmov 1983009808   ;;  %v3051_v30 = vshrl.u32 %v833_v26, 7 }
  0x5d   : > { %s3369_s4 = sld [smem:[#allocation19_spill]]  ;;  %s2764_s23 = smov 112   ;;  %2590 = vset.pattern.permute.xlu1 %v2765_v22  ;;  %v3048_v23 = vld [vmem:[%s556_s16] sm:$0x1]  ;;  %v831_v25 = vunpack.c.l.s4 %v2766_v24  ;;  %v2767_v27 = vmov 1934713408  }
  0x5e   : > { %s2318_s14 = sshll.u32 %s617_s12, 3  ;;  %s3370_s3 = sld [smem:[#allocation18_spill]]  ;;  %v863_v28 = vunpack.c.l.s4 %v2767_v27  ;;  %vm1268_vm2 = vcmask 64512   ;;  %vm1555_vm4 = vcmask 1043456   ;;  %vm1886_vm5 = vcmask 130048  }
  0x5f   : > { %v832_v29 = vunpack.c.0.s8 %v831_v25  ;;  %vm1888_vm6 = vcmask 195584   ;;  %s3373_s22 = sld [smem:[#allocation23_spill]]  ;;  %s2369_s21 = sshll.u32 %s2888_s0, 7 }
  0x60   : > { %s619_s20 = scalar_lea.vmem %s3367_s19, %s2318_s14  ;;  %v864_v33 = vunpack.c.0.s8 %v863_v28  ;;  %s2768_s19 = smov 16  }
  0x61   : > { %v2592_v1 = vld [vmem:[%s3368_s26 + $0x8] sm:$0xff]   ;;  %v2593_v2 = vld [vmem:[%s3368_s26] sm:$0xff]   ;;  %v3054_v34 = vsub.s32 %v832_v29, %v3051_v30  ;;  %s3371_s14 = sld [smem:[#allocation22_spill]]  ;;  %p3377_p11 = scmp.ne.s32.totalorder %s3360_s18, 0 }
  0x62   : > { %2413 = vmatpush3.bf16.msra.mxu0 %v2592_v1  ;;  %v3003_v3 = vld [vmem:[%s619_s20] sm:$0xff]  ;;  %s2762_s20 = smov 104   ;;  %v3057_v41 = vsub.s32 %v864_v33, %v3051_v30  ;;  %s3374_s16 = sld [smem:[#allocation24_spill]] }
  0x63   : > { %2414 = vmatprep.subr.bf16.mxu0 %v2760_v0  ;;  %v2594_v4 = vld [vmem:[%s3369_s4 + $0x8] sm:$0xff]   ;;  %v623_v5 = vpack.c.bf16 %v3003_v3, %v3003_v3  ;;  %v2595_v6 = vld [vmem:[%s3369_s4] sm:$0xff]   ;;  %s3375_s1 = sld [smem:[#allocation25_spill]]  ;;  %s2208_s4 = scalar_lea.sflag [#allocation4], %s2974_s25 }
  0x64   : > { %v2319_v10 = vld [vmem:[%s3370_s3] ss:$0 sm:$0xff]  ;;  %s2771_s17 = smov [#allocation7]  }
  0x66   : > { %2415 = vmatpush3.bf16.msra.mxu0 %v2593_v2 }
  0x67   : > { %2420 = vmatprep.subr.bf16.mxu0 %v2760_v0 }
  0x69   : > { %2417 = vmatmul.mubr.msk.bf16.vlgmr.msra.gmra.mxu0 %vm647_vm1, %v623_v5 }
  0x6a   : > { %2421 = vmatpush3.bf16.msra.mxu0 %v2594_v4  ;;  %2424 = vmatprep.mubr.msk.bf16.mxu0 %vm2761_vm0, %v2760_v0 }
  0x6b   : > { %2422 = vmatprep.subr.bf16.mxu0 %v2760_v0 }
  0x6e   : > { %2423 = vmatpush3.bf16.msra.mxu0 %v2595_v6 }
  0x6f   : > { %2428 = vmatprep.subr.bf16.mxu0 %v2760_v0 }
  0x71   : > { %2425 = vmatmul.mubr.msk.bf16.vlgmr.msra.gmra.mxu0 %vm647_vm1, %v623_v5 }
  0x72   : > { %2432 = vmatprep.mubr.msk.bf16.mxu0 %vm2761_vm0, %v2760_v0  ;;  %2429 = vmatpush3.bf16.msra.mxu0 %v2596_v18 }
  0x73   : > { %2430 = vmatprep.subr.bf16.mxu0 %v2760_v0 }
  0x76   : > { %2431 = vmatpush3.bf16.msra.mxu0 %v2597_v21 }
  0x77   : > { %2442 = vmatprep.subr.bf16.mxu0 %v2760_v0 }
  0x79   : > { %2433 = vmatmul.mubr.msk.bf16.vlgmr.msra.gmra.mxu0 %vm647_vm1, %v623_v5 }
  0x7a   : > { %2444 = vmatprep.mubr.msk.bf16.mxu0 %vm2761_vm0, %v2760_v0 }
 0x129   : > { %v685_v7 = vpop.f32.mrf.mxu0 }
 0x12a   : > { %v686_v14 = vadd.f32 %v2319_v10, %v685_v7 }
 0x12b   : > { %v2418_v8 = vpop.f32.mrf.mxu0 }
 0x12c   : > { %v817_v19 = vmul.f32 0.35355338, %v686_v14 }
 0x12d   : > { %v688_v9 = vpop.f32.mrf.mxu0 }
 0x12f   : > { %v2419_v11 = vpop.f32.mrf.mxu0 }
 0x131   : > { %v748_v13 = vpop.f32.mrf.mxu0 }
 0x132   : > { %v749_v15 = vadd.f32 %v2323_v12, %v748_v13 }
 0x133   : > { %v2426_v16 = vpop.f32.mrf.mxu0 }
 0x134   : > { %975 = vrot.lane.b32.xlu1 %v749_v15, %s2762_s20  ;;  %969 = vrot.lane.b32.xlu0 %v749_v15, %s2763_s2 }
 0x135   : > { %v751_v17 = vpop.f32.mrf.mxu0 }
 0x137   : > { %v2427_v20 = vpop.f32.mrf.mxu0 }
 0x138   : > { %819 = vrot.lane.b32.xlu1 %v817_v19, %s2763_s2  ;;  %972 = vrot.lane.b32.xlu0 %v749_v15, %s2764_s23 }
 0x13c   : > { %825 = vrot.lane.b32.xlu1 %v817_v19, %s2762_s20  ;;  %822 = vrot.lane.b32.xlu0 %v817_v19, %s2764_s23 }
 0x15a   : > { %1453 = vxpose.xlu0.b32.start.end [1/1] (short) (narrow) %v3048_v23, 8 }
 0x183   : > { %2591 = vset.pattern.permute.xlu0 %v2765_v22 }
 0x1a6   : > { %v976_v31 = vpop.permute.xlu1 %975  ;;  %v970_v32 = vpop.permute.xlu0 %969 }
 0x1a7   : > { %v994_v35 = vcombine.low %v970_v32, %v976_v31  ;;  %v995_v36 = vcombine.high %v970_v32, %v976_v31 }
 0x1a9   : > { %v1002_v42 = vrot.slane %v994_v35, %v3054_v34  ;;  %v1009_v43 = vrot.slane %v995_v36, %v3054_v34 }
 0x1aa   : > { %v820_v37 = vpop.permute.xlu1 %819  ;;  %v973_v38 = vpop.permute.xlu0 %972 }
 0x1ab   : > { %v978_v39 = vcombine.low %v749_v15, %v973_v38  ;;  %v979_v40 = vcombine.high %v749_v15, %v973_v38 }
 0x1ad   : > { %v986_v44 = vrot.slane %v978_v39, %v3054_v34  ;;  %v993_v45 = vrot.slane %v979_v40, %v3054_v34 }
 0x1ae   : > { %v826_v46 = vpop.permute.xlu1 %825  ;;  %v823_v47 = vpop.permute.xlu0 %822 }
 0x1af   : > { %v1010_v48 = vcombine.low %v986_v44, %v1002_v42  ;;  %v1011_v49 = vcombine.high %v986_v44, %v1002_v42  ;;  %v1026_v50 = vcombine.low %v993_v45, %v1009_v43  ;;  %v1027_v51 = vcombine.high %v993_v45, %v1009_v43 }
 0x1b0   : > { %v844_v52 = vcombine.low %v820_v37, %v826_v46  ;;  %v845_v53 = vcombine.high %v820_v37, %v826_v46  ;;  %v828_v54 = vcombine.low %v817_v19, %v823_v47  ;;  %v829_v55 = vcombine.high %v817_v19, %v823_v47 }
 0x1b1   : > { %v1018_v56 = vrot.slane %v1010_v48, %v3057_v41  ;;  %v1025_v57 = vrot.slane %v1011_v49, %v3057_v41  ;;  %v1034_v58 = vrot.slane %v1026_v50, %v3057_v41  ;;  %v1041_v59 = vrot.slane %v1027_v51, %v3057_v41 }
 0x1b2   : > { %v852_v60 = vrot.slane %v844_v52, %v3054_v34  ;;  %v859_v61 = vrot.slane %v845_v53, %v3054_v34  ;;  %v836_v62 = vrot.slane %v828_v54, %v3054_v34  ;;  %v843_v63 = vrot.slane %v829_v55, %v3054_v34 }
 0x1b3   : > { %v1046_v1 = vcombine.low %v1018_v56, %v1025_v57  ;;  %v2333_v2 = vcombine.high %v1018_v56, %v1025_v57  ;;  %v1062_v4 = vcombine.low %v1034_v58, %v1041_v59  ;;  %v2334_v5 = vcombine.high %v1034_v58, %v1041_v59 }
 0x1b4   : > { %v860_v6 = vcombine.low %v836_v62, %v852_v60  ;;  %v861_v7 = vcombine.high %v836_v62, %v852_v60  ;;  %v876_v8 = vcombine.low %v843_v63, %v859_v61  ;;  %v877_v9 = vcombine.high %v843_v63, %v859_v61 }
 0x1b5   : > { %v1053_v10 = vrot.slane %v1046_v1, %v3054_v34  ;;  %v1061_v11 = vrot.slane %v2333_v2, %v3054_v34  ;;  %v1069_v12 = vrot.slane %v1062_v4, %v3054_v34  ;;  %v1077_v13 = vrot.slane %v2334_v5, %v3054_v34  ;;  %v811_v5 = vpop.f32.mrf.mxu0 }
 0x1b6   : > { %v868_v14 = vrot.slane %v860_v6, %v3057_v41  ;;  %v875_v15 = vrot.slane %v861_v7, %v3057_v41  ;;  %v884_v16 = vrot.slane %v876_v8, %v3057_v41  ;;  %v891_v17 = vrot.slane %v877_v9, %v3057_v41 }
 0x1b7   : > { %v1078_v18 = vcombine.low %v1053_v10, %v1061_v11  ;;  %v1094_v19 = vcombine.low %v1069_v12, %v1077_v13  ;;  %v1079_v20 = vcombine.high %v1053_v10, %v1061_v11  ;;  %v1095_v21 = vcombine.high %v1069_v12, %v1077_v13  ;;  %v2434_v6 = vpop.f32.mrf.mxu0 }
 0x1b8   : > { %v896_v22 = vcombine.low %v868_v14, %v875_v15  ;;  %v2331_v24 = vcombine.high %v868_v14, %v875_v15  ;;  %v912_v25 = vcombine.low %v884_v16, %v891_v17  ;;  %v2332_v26 = vcombine.high %v884_v16, %v891_v17 }
 0x1b9   : > { %v1086_v27 = vrot.slane %v1078_v18, %v3057_v41  ;;  %v1102_v28 = vrot.slane %v1094_v19, %v3057_v41  ;;  %v1093_v37 = vrot.slane %v1079_v20, %v3057_v41  ;;  %v1109_v38 = vrot.slane %v1095_v21, %v3057_v41  ;;  %v814_v7 = vpop.f32.mrf.mxu0 }
 0x1ba   : > { %v903_v29 = vrot.slane %v896_v22, %v3054_v34  ;;  %v911_v31 = vrot.slane %v2331_v24, %v3054_v34  ;;  %v919_v32 = vrot.slane %v912_v25, %v3054_v34  ;;  %v927_v33 = vrot.slane %v2332_v26, %v3054_v34 }
 0x1bb   : > { %v1110_v35 = vcombine.low %v1086_v27, %v1102_v28  ;;  %v1111_v36 = vcombine.high %v1086_v27, %v1102_v28  ;;  %v1112_v48 = vcombine.low %v1093_v37, %v1109_v38  ;;  %v1113_v49 = vcombine.high %v1093_v37, %v1109_v38  ;;  %v2435_v8 = vpop.f32.mrf.mxu0  ;;  %v2327_v38 = vld [vmem:[%s3314_s7] ss:$0 sm:$0xff] }
 0x1bc   : > { %v928_v39 = vcombine.low %v903_v29, %v911_v31  ;;  %v944_v40 = vcombine.low %v919_v32, %v927_v33  ;;  %v929_v50 = vcombine.high %v903_v29, %v911_v31  ;;  %v945_v51 = vcombine.high %v919_v32, %v927_v33 }
 0x1bd   : > { %v1114_v42 = vpack.c.bf16 %v1110_v35, %v1110_v35  ;;  %v1115_v43 = vpack.c.bf16 %v1111_v36, %v1111_v36  ;;  %v1116_v54 = vpack.c.bf16 %v1112_v48, %v1112_v48  ;;  %v1117_v55 = vpack.c.bf16 %v1113_v49, %v1113_v49 }
 0x1be   : > { %v936_v44 = vrot.slane %v928_v39, %v3057_v41  ;;  %v952_v45 = vrot.slane %v944_v40, %v3057_v41  ;;  %v943_v58 = vrot.slane %v929_v50, %v3057_v41  ;;  %v959_v59 = vrot.slane %v945_v51, %v3057_v41 }
 0x1bf   : > { %v1273_v46 = vsel %vm1268_vm2, %v1114_v42, 0  ;;  %v1319_v47 = vsel %vm1268_vm2, %v1115_v43, 0  ;;  %v1365_v60 = vsel %vm1268_vm2, %v1116_v54, 0  ;;  %v1411_v61 = vsel %vm1268_vm2, %v1117_v55, 0 }
 0x1c0   : > { %2437 = vmatpush3.bf16.xpose.msra.mxu1 %v1273_v46  ;;  %2443 = vmatpush3.bf16.xpose.msra.mxu0 %v1319_v47  ;;  %v960_v52 = vcombine.low %v936_v44, %v952_v45  ;;  %v961_v53 = vcombine.high %v936_v44, %v952_v45  ;;  %v962_v62 = vcombine.low %v943_v58, %v959_v59  ;;  %v1493_v9 = vsub.s32 0, %v3051_v30 }
 0x1c1   : > { %2448 = vmatprep.subr.bf16.mxu1 %v2760_v0  ;;  %2454 = vmatprep.subr.bf16.mxu0 %v2760_v0  ;;  %v963_v63 = vcombine.high %v943_v58, %v959_v59  ;;  %v812_v39 = vadd.f32 %v2327_v38, %v811_v5 }
 0x1c2   : > { %v964_v56 = vpack.c.bf16 %v960_v52, %v960_v52  ;;  %v965_v57 = vpack.c.bf16 %v961_v53, %v961_v53  ;;  %v966_v1 = vpack.c.bf16 %v962_v62, %v962_v62  ;;  %v1494_v10 = vrot.slane %v3048_v23, %v1493_v9 }
 0x1c3   : > { %v967_v2 = vpack.c.bf16 %v963_v63, %v963_v63 }
 0x1c7   : > { %2439 = vmatmul.mubr.msk.bf16.vlgmr.msra.gmra.mxu1 %vm1268_vm2, %v964_v56  ;;  %2445 = vmatmul.mubr.msk.bf16.vlgmr.msra.gmra.mxu0 %vm1268_vm2, %v965_v57 }
 0x1c8   : > { %2449 = vmatpush3.bf16.xpose.msra.mxu1 %v1365_v60  ;;  %2455 = vmatpush3.bf16.xpose.msra.mxu0 %v1411_v61 }
 0x1c9   : > { %2450 = vmatprep.mubr.msk.bf16.mxu1 %vm2761_vm0, %v2760_v0  ;;  %2456 = vmatprep.mubr.msk.bf16.mxu0 %vm2761_vm0, %v2760_v0 }
 0x1ca   : > { %2460 = vmatprep.subr.bf16.mxu1 %v2760_v0  ;;  %2466 = vmatprep.subr.bf16.mxu0 %v2760_v0 }
 0x1cf   : > { %2451 = vmatmul.mubr.msk.bf16.vlgmr.msra.gmra.mxu1 %vm1268_vm2, %v966_v1  ;;  %2457 = vmatmul.mubr.msk.bf16.vlgmr.msra.gmra.mxu0 %vm1268_vm2, %v967_v2 }
 0x1d0   : > { %2462 = vmatprep.mubr.msk.bf16.mxu1 %vm2761_vm0, %v2760_v0  ;;  %2468 = vmatprep.mubr.msk.bf16.mxu0 %vm2761_vm0, %v2760_v0 }
 0x1d6   : > { %v1469_v4 = vpop.trf.xlu0 }
 0x1d7   : > { %1487 = vperm.xlu1 %2590, %v1469_v4  }
 0x252   : > { %v1488_v11 = vpop.permute.xlu1 %1487 }
 0x253   : > { %v1496_v12 = vmul.f32 %v1494_v10, %v1488_v11 }
 0x255   : > { %vm1497_vm3 = vcmp.eq.f32.partialorder %v1496_v12, 0.0 }
 0x287   : > { %v1309_v13 = vpop.f32.mrf.mxu1  ;;  %v1355_v14 = vpop.f32.mrf.mxu0 }
 0x288   : > { %v1500_v15 = vsel %vm1497_vm3, -1e+09, %v1309_v13  ;;  %v1501_v16 = vsel %vm1497_vm3, -1e+09, %v1355_v14 }
 0x289   : > { %v2440_v17 = vpop.f32.mrf.mxu1  ;;  %v2446_v18 = vpop.f32.mrf.mxu0  ;;  %v1504_v19 = vsel %vm1268_vm2, %v1500_v15, -inf  ;;  %v1507_v20 = vsel %vm1268_vm2, %v1501_v16, -inf }
 0x28a   : > { %1505 = vmax.xlane.f32.xlu1 %v1504_v19  ;;  %1508 = vmax.xlane.f32.xlu0 %v1507_v20 }
 0x28b   : > { %v1312_v30 = vpop.f32.mrf.mxu1  ;;  %v1358_v21 = vpop.f32.mrf.mxu0 }
 0x28d   : > { %v2441_v23 = vpop.f32.mrf.mxu1  ;;  %v2447_v22 = vpop.f32.mrf.mxu0 }
 0x28f   : > { %v1401_v24 = vpop.f32.mrf.mxu1  ;;  %v1447_v25 = vpop.f32.mrf.mxu0 }
 0x290   : > { %v1502_v26 = vsel %vm1497_vm3, -1e+09, %v1401_v24  ;;  %v1503_v31 = vsel %vm1497_vm3, -1e+09, %v1447_v25 }
 0x291   : > { %v2452_v27 = vpop.f32.mrf.mxu1  ;;  %v2458_v28 = vpop.f32.mrf.mxu0  ;;  %v1510_v29 = vsel %vm1268_vm2, %v1502_v26, -inf  ;;  %v1513_v37 = vsel %vm1268_vm2, %v1503_v31, -inf }
 0x292   : > { %1511 = vmax.xlane.f32.xlu1 %v1510_v29 }
 0x293   : > { %v1404_v32 = vpop.f32.mrf.mxu1  ;;  %v1450_v33 = vpop.f32.mrf.mxu0 }
 0x295   : > { %v2453_v35 = vpop.f32.mrf.mxu1  ;;  %v2459_v36 = vpop.f32.mrf.mxu0 }
 0x296   : > { %1514 = vmax.xlane.f32.xlu1 %v1513_v37 }
 0x2a0   : > { %1125 = vrot.lane.b32.xlu0 %v812_v39, %s2762_s20  ;;  %s2769_s20 = smov 8  }
 0x2a7   : > { %1119 = vrot.lane.b32.xlu1 %v812_v39, %s2763_s2  ;;  %s2770_s2 = smov 24  }
 0x313   : > { %v1506_v40 = vpop.xlane.xlu1 %1505  ;;  %v1509_v42 = vpop.xlane.xlu0 %1508 }
 0x314   : > { %v1516_v43 = vsub.f32 %v1500_v15, %v1506_v40  ;;  %v1517_v44 = vsub.f32 %v1501_v16, %v1509_v42 }
 0x316   : > { %v1520_v45 = vmul.f32 1.442695, %v1516_v43  ;;  %v1522_v46 = vmul.f32 1.442695, %v1517_v44 }
 0x317   : > { %v1126_v1 = vpop.permute.xlu0 %1125 }
 0x318   : > { %2610 = vpow2.f32 %v1520_v45 }
 0x319   : > { %2612 = vpow2.f32 %v1522_v46 }
 0x31b   : > { %v1512_v47 = vpop.xlane.xlu1 %1511 }
 0x31c   : > { %v1518_v57 = vsub.f32 %v1502_v26, %v1512_v47 }
 0x31e   : > { %v1524_v58 = vmul.f32 1.442695, %v1518_v57 }
 0x31f   : > { %v1515_v48 = vpop.xlane.xlu1 %1514 }
 0x320   : > { %v1519_v49 = vsub.f32 %v1503_v31, %v1515_v48 }
 0x322   : > { %v1526_v50 = vmul.f32 1.442695, %v1519_v49 }
 0x323   : > { %v1120_v61 = vpop.permute.xlu1 %1119 }
 0x324   : > { %2614 = vpow2.f32 %v1526_v50  ;;  %v1144_v2 = vcombine.low %v1120_v61, %v1126_v1  ;;  %v1145_v4 = vcombine.high %v1120_v61, %v1126_v1 }
 0x325   : > { %v3126_v51 = vpop.eup %2610  ;;  %2616 = vpow2.f32 %v1524_v58 }
 0x326   : > { %v1528_v52 = vsel %vm1268_vm2, %v3126_v51, 0.0  ;;  %v3130_v53 = vpop.eup %2612  ;;  %v1152_v8 = vrot.slane %v1144_v2, %v3054_v34  ;;  %v1159_v9 = vrot.slane %v1145_v4, %v3054_v34 }
 0x327   : > { %1529 = vadd.xlane.f32.xlu1 %v1528_v52  ;;  %v1531_v54 = vsel %vm1268_vm2, %v3130_v53, 0.0 }
 0x32b   : > { %1532 = vadd.xlane.f32.xlu1 %v1531_v54 }
 0x331   : > { %v3134_v55 = vpop.eup %2614 }
 0x332   : > { %v1537_v56 = vsel %vm1268_vm2, %v3134_v55, 0.0  ;;  %v3139_v59 = vpop.eup %2616 }
 0x333   : > { %1538 = vadd.xlane.f32.xlu0 %v1537_v56  ;;  %v1534_v60 = vsel %vm1268_vm2, %v3139_v59, 0.0 }
 0x33c   : > { %1122 = vrot.lane.b32.xlu1 %v812_v39, %s2764_s23  ;;  %s2317_s23 = sshll.u32 %s2974_s25, 3 }
 0x360   : > { %1535 = vadd.xlane.f32.xlu1 %v1534_v60 }
 0x3b0   : > { %v1530_v62 = vpop.xlane.xlu1 %1529 }
 0x3b1   : > { %2618 = vrcp.f32 %v1530_v62 }
 0x3b4   : > { %v1533_v63 = vpop.xlane.xlu1 %1532 }
 0x3b5   : > { %2620 = vrcp.f32 %v1533_v63 }
 0x3b8   : > { %v1123_v5 = vpop.permute.xlu1 %1122 }
 0x3b9   : > { %v1128_v6 = vcombine.low %v812_v39, %v1123_v5  ;;  %v1129_v7 = vcombine.high %v812_v39, %v1123_v5 }
 0x3bb   : > { %v1136_v10 = vrot.slane %v1128_v6, %v3054_v34  ;;  %v1143_v11 = vrot.slane %v1129_v7, %v3054_v34 }
 0x3bc   : > { %v1539_v20 = vpop.xlane.xlu0 %1538 }
 0x3bd   : > { %v1160_v12 = vcombine.low %v1136_v10, %v1152_v8  ;;  %v1161_v13 = vcombine.high %v1136_v10, %v1152_v8  ;;  %v1176_v14 = vcombine.low %v1143_v11, %v1159_v9  ;;  %v1177_v15 = vcombine.high %v1143_v11, %v1159_v9 }
 0x3be   : > { %2622 = vrcp.f32 %v1539_v20  ;;  %v2619_v33 = vpop.eup %2618 }
 0x3bf   : > { %v1168_v16 = vrot.slane %v1160_v12, %v3057_v41  ;;  %v1175_v17 = vrot.slane %v1161_v13, %v3057_v41  ;;  %v1184_v18 = vrot.slane %v1176_v14, %v3057_v41  ;;  %v1191_v19 = vrot.slane %v1177_v15, %v3057_v41 }
 0x3c0   : > { %v1544_v47 = vmul.f32 %v2619_v33, %v3126_v51 }
 0x3c1   : > { %v1196_v30 = vcombine.low %v1168_v16, %v1175_v17  ;;  %v2335_v21 = vcombine.high %v1168_v16, %v1175_v17  ;;  %v1212_v23 = vcombine.low %v1184_v18, %v1191_v19  ;;  %v2336_v22 = vcombine.high %v1184_v18, %v1191_v19 }
 0x3c2   : > { %v2621_v39 = vpop.eup %2620  ;;  %v1548_v57 = vpack.c.bf16 %v1544_v47, %v1544_v47 }
 0x3c3   : > { %v1203_v24 = vrot.slane %v1196_v30, %v3054_v34  ;;  %v1211_v25 = vrot.slane %v2335_v21, %v3054_v34  ;;  %v1219_v26 = vrot.slane %v1212_v23, %v3054_v34  ;;  %v1227_v27 = vrot.slane %v2336_v22, %v3054_v34 }
 0x3c4   : > { %v1545_v48 = vmul.f32 %v2621_v39, %v3130_v53 }
 0x3c5   : > { %v1228_v28 = vcombine.low %v1203_v24, %v1211_v25  ;;  %v1244_v29 = vcombine.low %v1219_v26, %v1227_v27  ;;  %v1229_v31 = vcombine.high %v1203_v24, %v1211_v25  ;;  %v1245_v32 = vcombine.high %v1219_v26, %v1227_v27 }
 0x3c6   : > { %v1549_v58 = vpack.c.bf16 %v1545_v48, %v1545_v48 }
 0x3c7   : > { %v1236_v35 = vrot.slane %v1228_v28, %v3057_v41  ;;  %v1252_v36 = vrot.slane %v1244_v29, %v3057_v41  ;;  %v1243_v37 = vrot.slane %v1229_v31, %v3057_v41  ;;  %v1259_v38 = vrot.slane %v1245_v32, %v3057_v41  ;;  %v2598_v29 = vld [vmem:[%s3315_s8 + $0x8] sm:$0xff]  }
 0x3c9   : > { %v1260_v40 = vcombine.low %v1236_v35, %v1252_v36  ;;  %v1261_v42 = vcombine.high %v1236_v35, %v1252_v36  ;;  %v1262_v43 = vcombine.low %v1243_v37, %v1259_v38  ;;  %v1263_v44 = vcombine.high %v1243_v37, %v1259_v38 }
 0x3cb   : > { %v1264_v45 = vpack.c.bf16 %v1260_v40, %v1260_v40  ;;  %v1265_v46 = vpack.c.bf16 %v1261_v42, %v1261_v42  ;;  %v1266_v52 = vpack.c.bf16 %v1262_v43, %v1262_v43  ;;  %v1267_v54 = vpack.c.bf16 %v1263_v44, %v1263_v44  ;;  %v2623_v56 = vpop.eup %2622  ;;  %v2599_v40 = vld [vmem:[%s3315_s8] sm:$0xff]  }
 0x3cc   : > { %v1547_v60 = vmul.f32 %v2623_v56, %v3134_v55 }
 0x3cd   : > { %v1557_v49 = vsel %vm1555_vm4, %v1264_v45, 0  ;;  %v1603_v50 = vsel %vm1555_vm4, %v1265_v46, 0  ;;  %v1649_v51 = vsel %vm1555_vm4, %v1266_v52, 0  ;;  %v1695_v53 = vsel %vm1555_vm4, %v1267_v54, 0 }
 0x3ce   : > { %2461 = vmatpush3.bf16.msra.mxu1 %v1557_v49  ;;  %2467 = vmatpush3.bf16.msra.mxu0 %v1603_v50  ;;  %v1551_v61 = vpack.c.bf16 %v1547_v60, %v1547_v60 }
 0x3cf   : > { %2472 = vmatprep.subr.bf16.mxu1 %v2760_v0  ;;  %2478 = vmatprep.subr.bf16.mxu0 %v2760_v0 }
 0x3d1   : > { %2463 = vmatmul.mubr.msk.bf16.vlgmr.msra.gmra.mxu1 %vm1268_vm2, %v1548_v57  ;;  %2469 = vmatmul.mubr.msk.bf16.vlgmr.msra.gmra.mxu0 %vm1268_vm2, %v1549_v58 }
 0x3d2   : > { %2473 = vmatpush3.bf16.msra.mxu1 %v1649_v51  ;;  %2479 = vmatpush3.bf16.msra.mxu0 %v1695_v53 }
 0x3d3   : > { %2480 = vmatprep.mubr.msk.bf16.mxu0 %vm2761_vm0, %v2760_v0  ;;  %2474 = vmatprep.mubr.msk.bf16.mxu1 %vm2761_vm0, %v2760_v0 }
 0x3d4   : > { %2484 = vmatprep.subr.bf16.mxu1 %v2760_v0  ;;  %2492 = vmatprep.subr.bf16.mxu0 %v2760_v0 }
 0x3d9   : > { %2481 = vmatmul.mubr.msk.bf16.vlgmr.msra.gmra.mxu0 %vm1268_vm2, %v1551_v61 }
 0x3da   : > { %2496 = vmatprep.mubr.msk.bf16.mxu0 %vm2761_vm0, %v2760_v0 }
 0x3e9   : > { %v1536_v62 = vpop.xlane.xlu1 %1535 }
 0x3ea   : > { %2624 = vrcp.f32 %v1536_v62 }
 0x3f7   : > { %v2625_v63 = vpop.eup %2624 }
 0x3f8   : > { %v1546_v1 = vmul.f32 %v2625_v63, %v3139_v59 }
 0x3fa   : > { %v1550_v2 = vpack.c.bf16 %v1546_v1, %v1546_v1 }
 0x3fc   : > { %2475 = vmatmul.mubr.msk.bf16.vlgmr.msra.gmra.mxu1 %vm1268_vm2, %v1550_v2  ;;  %v2347_v2 = vld [vmem:[%s3316_s9] ss:$0 sm:$0xff] }
 0x3fd   : > { %2488 = vmatprep.mubr.msk.bf16.mxu1 %vm2761_vm0, %v2760_v0  ;;  %2485 = vmatpush3.bf16.msra.mxu1 %v2598_v29  ;;  %v2607_v29 = vld [vmem:[%s3371_s14 + $0x10] sm:$0xff]  }
 0x3fe   : > { %2486 = vmatprep.subr.bf16.mxu1 %v2760_v0 }
 0x401   : > { %2487 = vmatpush3.bf16.msra.mxu1 %v2599_v40 }
 0x402   : > { %2500 = vmatprep.subr.bf16.mxu1 %v2760_v0 }
 0x491   : > { %v1593_v55 = vpop.f32.mrf.mxu1  ;;  %v1639_v4 = vpop.f32.mrf.mxu0 }
 0x493   : > { %v2464_v5 = vpop.f32.mrf.mxu1  ;;  %v2470_v6 = vpop.f32.mrf.mxu0 }
 0x495   : > { %v1596_v7 = vpop.f32.mrf.mxu1  ;;  %v1642_v8 = vpop.f32.mrf.mxu0 }
 0x497   : > { %v2465_v9 = vpop.f32.mrf.mxu1  ;;  %v2471_v10 = vpop.f32.mrf.mxu0 }
 0x499   : > { %v1731_v11 = vpop.f32.mrf.mxu0 }
 0x49a   : > { %v1753_v15 = vcombine.low %v1639_v4, %v1731_v11  ;;  %v1754_v59 = vcombine.high %v1639_v4, %v1731_v11 }
 0x49b   : > { %v2482_v12 = vpop.f32.mrf.mxu0 }
 0x49c   : > { %v1761_v20 = vrot.slane %v1753_v15, %v3054_v34  ;;  %v1768_v30 = vrot.slane %v1754_v59, %v3054_v34  ;;  %v2600_v15 = vld [vmem:[#allocation5 + $0x8] sm:$0xff]   ;;  %v2601_v59 = vld [vmem:[#allocation5] sm:$0xff]  }
 0x49d   : > { %v1734_v13 = vpop.f32.mrf.mxu0  ;;  %2493 = vmatpush3.bf16.msra.mxu0 %v2600_v15 }
 0x49e   : > { %2494 = vmatprep.subr.bf16.mxu0 %v2760_v0 }
 0x49f   : > { %v2483_v14 = vpop.f32.mrf.mxu0 }
 0x4a1   : > { %2495 = vmatpush3.bf16.msra.mxu0 %v2601_v59 }
 0x4bc   : > { %v1685_v16 = vpop.f32.mrf.mxu1 }
 0x4bd   : > { %v1737_v17 = vcombine.low %v1593_v55, %v1685_v16  ;;  %v1738_v18 = vcombine.high %v1593_v55, %v1685_v16 }
 0x4be   : > { %v2476_v19 = vpop.f32.mrf.mxu1 }
 0x4bf   : > { %v1745_v21 = vrot.slane %v1737_v17, %v3054_v34  ;;  %v1752_v23 = vrot.slane %v1738_v18, %v3054_v34  ;;  %v2351_v19 = vld [vmem:[%s3317_s10] ss:$0 sm:$0xff] }
 0x4c0   : > { %v1688_v22 = vpop.f32.mrf.mxu1 }
 0x4c1   : > { %v1769_v24 = vcombine.low %v1745_v21, %v1761_v20  ;;  %v1770_v25 = vcombine.high %v1745_v21, %v1761_v20  ;;  %v1785_v26 = vcombine.low %v1752_v23, %v1768_v30  ;;  %v1786_v27 = vcombine.high %v1752_v23, %v1768_v30  ;;  %v2352_v30 = vld [vmem:[%s3318_s11] ss:$0 sm:$0xff] }
 0x4c2   : > { %v2477_v28 = vpop.f32.mrf.mxu1 }
 0x4c3   : > { %v1777_v31 = vrot.slane %v1769_v24, %v3057_v41  ;;  %v1784_v32 = vrot.slane %v1770_v25, %v3057_v41  ;;  %v1793_v33 = vrot.slane %v1785_v26, %v3057_v41  ;;  %v1800_v35 = vrot.slane %v1786_v27, %v3057_v41  ;;  %v2602_v24 = vld [vmem:[%s3371_s14 + $0x38] sm:$0xff]   ;;  %v2603_v25 = vld [vmem:[%s3371_s14 + $0x30] sm:$0xff]   ;;  %v2604_v26 = vld [vmem:[%s3371_s14 + $0x28] sm:$0xff]  }
 0x4c4   : > { %v2605_v27 = vld [vmem:[%s3371_s14 + $0x20] sm:$0xff]   ;;  %v2606_v28 = vld [vmem:[%s3371_s14 + $0x18] sm:$0xff]  }
 0x4c5   : > { %v1805_v36 = vcombine.low %v1777_v31, %v1784_v32  ;;  %v2345_v37 = vcombine.high %v1777_v31, %v1784_v32  ;;  %v1821_v38 = vcombine.low %v1793_v33, %v1800_v35  ;;  %v2346_v39 = vcombine.high %v1793_v33, %v1800_v35  ;;  %v2608_v31 = vld [vmem:[%s3371_s14 + $0x8] sm:$0xff]   ;;  %v2609_v32 = vld [vmem:[%s3371_s14] sm:$0xff]  }
 0x4c7   : > { %v1812_v42 = vrot.slane %v1805_v36, %v3054_v34  ;;  %v1820_v43 = vrot.slane %v2345_v37, %v3054_v34  ;;  %v1828_v44 = vrot.slane %v1821_v38, %v3054_v34  ;;  %v1836_v45 = vrot.slane %v2346_v39, %v3054_v34 }
 0x4c9   : > { %v1838_v46 = vcombine.high %v1812_v42, %v1820_v43  ;;  %v1854_v47 = vcombine.high %v1828_v44, %v1836_v45  ;;  %v1837_v48 = vcombine.low %v1812_v42, %v1820_v43  ;;  %v1853_v49 = vcombine.low %v1828_v44, %v1836_v45 }
 0x4cb   : > { %v1852_v50 = vrot.slane %v1838_v46, %v3057_v41  ;;  %v1868_v52 = vrot.slane %v1854_v47, %v3057_v41  ;;  %v1845_v54 = vrot.slane %v1837_v48, %v3057_v41  ;;  %v1861_v56 = vrot.slane %v1853_v49, %v3057_v41 }
 0x4cd   : > { %v1871_v57 = vcombine.low %v1852_v50, %v1868_v52  ;;  %v1870_v58 = vcombine.high %v1845_v54, %v1861_v56  ;;  %v1869_v51 = vcombine.low %v1845_v54, %v1861_v56  ;;  %v1872_v34 = vcombine.high %v1852_v50, %v1868_v52  ;;  %v2357_v50 = vld [vmem:[%s3373_s22] ss:$0 sm:$0xff]  ;;  %s3376_s22 = sld [smem:[#allocation26_spill]] }
 0x4cf   : > { %1878 = vrot.lane.b32.xlu0 %v1871_v57, %s2768_s19  ;;  %1874 = vrot.lane.b32.xlu1 %v1870_v58, %s2769_s20  ;;  %s3372_s20 = sld [smem:[#allocation21_spill]]  ;;  %s615_s19 = scalar_lea.vmem [#allocation7], %s2317_s23 }
 0x4d3   : > { %1882 = vrot.lane.b32.xlu1 %v1872_v34, %s2770_s2  ;;  %s2219_s3 = scalar_lea.hbm %s3376_s22, %s2369_s21 }
 0x4d5   : > { %v2353_v33 = vld [vmem:[%s3372_s20] ss:$0 sm:$0xff]  ;;  %s2221_s20 = sshll.u32 %s615_s19, 4  ;;  %s2222_s20 = int_to_ptr.vmem [resolvable:$true] %s2221_s20 }
 0x4d6   : > { %s2686_s27 = scalar_lea.vmem %s2222_s20, 128 }
 0x4d7   : > { %p2687_p3 = scmp.ne.s32.totalorder %s2222_s20, %s2686_s27 }
 0x4d9   : > { %p2688_p7 = pnand %p2687_p3, %p3377_p11 }
 0x4db   : > { %p2689_p10 = pneg %p2688_p7 }
 0x541   : > { %v1875_v53 = vpop.permute.xlu1 %1874  ;;  %v1879_v60 = vpop.permute.xlu0 %1878 }
 0x542   : > { %v1885_v61 = vsel %vm1268_vm2, %v1869_v51, %v1875_v53 }
 0x543   : > { %v1887_v63 = vsel %vm1886_vm5, %v1885_v61, %v1879_v60 }
 0x545   : > { %v1883_v62 = vpop.permute.xlu1 %1882 }
 0x546   : > { %v1889_v1 = vsel %vm1888_vm6, %v1887_v63, %v1883_v62 }
 0x547   : > { %v1890_v41 = vpack.c.bf16 %v1889_v1, %v1889_v1 }
 0x549   : > { %2489 = vmatmul.mubr.msk.bf16.vlgmr.msra.gmra.mxu1 %vm647_vm1, %v1890_v41 }
 0x54a   : > { %2516 = vmatprep.mubr.msk.bf16.mxu1 %vm2761_vm0, %v2760_v0  ;;  %2501 = vmatpush3.bf16.msra.mxu1 %v2602_v24 }
 0x54b   : > { %2502 = vmatprep.subr.bf16.mxu1 %v2760_v0 }
 0x54e   : > { %2503 = vmatpush3.bf16.msra.mxu1 %v2603_v25 }
 0x54f   : > { %2504 = vmatprep.subr.bf16.mxu1 %v2760_v0 }
 0x552   : > { %2505 = vmatpush3.bf16.msra.mxu1 %v2604_v26 }
 0x553   : > { %2506 = vmatprep.subr.bf16.mxu1 %v2760_v0 }
 0x556   : > { %2507 = vmatpush3.bf16.msra.mxu1 %v2605_v27 }
 0x557   : > { %2508 = vmatprep.subr.bf16.mxu1 %v2760_v0 }
 0x55a   : > { %2509 = vmatpush3.bf16.msra.mxu1 %v2606_v28 }
 0x55b   : > { %2510 = vmatprep.subr.bf16.mxu1 %v2760_v0 }
 0x55e   : > { %2511 = vmatpush3.bf16.msra.mxu1 %v2607_v29 }
 0x55f   : > { %2512 = vmatprep.subr.bf16.mxu1 %v2760_v0 }
 0x562   : > { %2513 = vmatpush3.bf16.msra.mxu1 %v2608_v31 }
 0x563   : > { %2514 = vmatprep.subr.bf16.mxu1 %v2760_v0 }
 0x566   : > { %2515 = vmatpush3.bf16.msra.mxu1 %v2609_v32 }
 0x609   : > { %v1951_v55 = vpop.f32.mrf.mxu1 }
 0x60a   : > { %v1952_v4 = vadd.f32 %v2347_v2, %v1951_v55 }
 0x60b   : > { %v2490_v5 = vpop.f32.mrf.mxu1 }
 0x60c   : > { %v1957_v6 = vadd.f32 %v1952_v4, %v3003_v3  ;;  %v2366_v4 = vld [vmem:[%s3374_s16] ss:$0 sm:$0xff]  ;;  %s2690_s16 = sshll.u32 %s2771_s17, 4  ;;  %s2691_s16 = int_to_ptr.vmem [resolvable:$false] %s2690_s16 }
 0x60d   : > { %v1954_v7 = vpop.f32.mrf.mxu1  ;;  %s2692_s0 = scalar_lea.vmem %s2691_s16, 256  ;;  %p2693_p2 = scmp.lt.s32.totalorder %s2222_s20, %s2691_s16 }
 0x60e   : > { %v1960_v8 = vsel %vm647_vm1, %v1957_v6, 0.0  ;;  %p2694_p13 = scmp.lt.s32.totalorder %s2692_s0, %s2686_s27 }
 0x60f   : > { %1961 = vadd.xlane.f32.xlu1 %v1960_v8  ;;  %v2491_v9 = vpop.f32.mrf.mxu1 }
 0x610   : > { %p2695_p0 = por %p2694_p13, %p2693_p2 }
 0x612   : > { %p2696_p5 = pnand %p2695_p0, %p2689_p10 }
 0x698   : > { %v1962_v10 = vpop.xlane.xlu1 %1961 }
 0x699   : > { %v1964_v11 = vmul.f32 0.03125, %v1962_v10 }
 0x69b   : > { %v1965_v12 = vsub.f32 %v1957_v6, %v1964_v11  ;;  %v2367_v6 = vld [vmem:[%s3375_s1] ss:$0 sm:$0xff] }
 0x69d   : > { %v1966_v13 = vmul.f32 %v1965_v12, %v1965_v12 }
 0x69f   : > { %v1967_v14 = vsel %vm647_vm1, %v1966_v13, 0.0 }
 0x6a0   : > { %1968 = vadd.xlane.f32.xlu0 %v1967_v14 }
 0x729   : > { %v1969_v16 = vpop.xlane.xlu0 %1968 }
 0x72a   : > { %v1970_v3 = vmul.f32 0.03125, %v1969_v16 }
 0x72c   : > { %v1971_v17 = vadd.f32 1e-05, %v1970_v3 }
 0x72e   : > { %2626 = vrsqrt.f32 %v1971_v17 }
 0x73b   : > { %v2627_v18 = vpop.eup %2626 }
 0x73c   : > { %v1973_v20 = vmul.f32 %v2627_v18, %v1965_v12 }
 0x73e   : > { %v1980_v21 = vmul.f32 %v2351_v19, %v1973_v20 }
 0x740   : > { %v1987_v23 = vadd.f32 %v2352_v30, %v1980_v21 }
 0x742   : > { %v1988_v22 = vpack.c.bf16 %v1987_v23, %v1987_v23 }
 0x744   : > { %2497 = vmatmul.mubr.msk.bf16.vlgmr.msra.gmra.mxu0 %vm647_vm1, %v1988_v22 }
 0x804   : > { %v2049_v35 = vpop.f32.mrf.mxu0 }
 0x805   : > { %v2050_v36 = vadd.f32 %v2353_v33, %v2049_v35 }
 0x806   : > { %v2498_v37 = vpop.f32.mrf.mxu0 }
 0x807   : > { %v2056_v38 = vmul.f32 0.044715, %v2050_v36  ;;  %v2055_v47 = vmul.f32 0.5, %v2050_v36 }
 0x808   : > { %v2052_v39 = vpop.f32.mrf.mxu0 }
 0x809   : > { %v2057_v40 = vmul.f32 %v2056_v38, %v2050_v36 }
 0x80a   : > { %v2499_v42 = vpop.f32.mrf.mxu0 }
 0x80b   : > { %v2058_v43 = vmul.f32 %v2057_v40, %v2050_v36 }
 0x80d   : > { %v2059_v44 = vadd.f32 %v2058_v43, %v2050_v36 }
 0x80f   : > { %v2060_v45 = vmul.f32 0.7978846, %v2059_v44 }
 0x811   : > { %2628 = vtanh.f32 %v2060_v45 }
 0x81e   : > { %v2629_v46 = vpop.eup %2628 }
 0x81f   : > { %v2062_v48 = vadd.f32 1.0, %v2629_v46 }
 0x821   : > { %v2063_v0 = vmul.f32 %v2062_v48, %v2055_v47 }
 0x823   : > { %v2064_v49 = vpack.c.bf16 %v2063_v0, %v2063_v0 }
 0x825   : > { %2517 = vmatmul.mubr.bf16.vlgmr.msra.gmra.mxu1 %v2064_v49 }
 0x8e5   : > { %v2170_v52 = vpop.f32.mrf.mxu1 }
 0x8e6   : > { %v2171_v54 = vadd.f32 %v2357_v50, %v2170_v52 }
 0x8e7   : > { %v2518_v56 = vpop.f32.mrf.mxu1 }
 0x8e8   : > { %v2176_v57 = vadd.f32 %v2171_v54, %v1987_v23 }
 0x8e9   : > { %v2173_v58 = vpop.f32.mrf.mxu1 }
 0x8ea   : > { %v2179_v51 = vsel %vm647_vm1, %v2176_v57, 0.0 }
 0x8eb   : > { %2180 = vadd.xlane.f32.xlu1 %v2179_v51  ;;  %v2519_v34 = vpop.f32.mrf.mxu1 }
 0x974   : > { %v2181_v53 = vpop.xlane.xlu1 %2180 }
 0x975   : > { %v2182_v60 = vmul.f32 0.03125, %v2181_v53 }
 0x977   : > { %v2183_v61 = vsub.f32 %v2176_v57, %v2182_v60 }
 0x979   : > { %v2184_v62 = vmul.f32 %v2183_v61, %v2183_v61 }
 0x97b   : > { %v2185_v63 = vsel %vm647_vm1, %v2184_v62, 0.0 }
 0x97c   : > { %2186 = vadd.xlane.f32.xlu1 %v2185_v63 }
 0xa05   : > { %v2187_v1 = vpop.xlane.xlu1 %2186 }
 0xa06   : > { %v2188_v41 = vmul.f32 0.03125, %v2187_v1 }
 0xa08   : > { %v2189_v2 = vadd.f32 1e-05, %v2188_v41 }
 0xa0a   : > { %2630 = vrsqrt.f32 %v2189_v2 }
 0xa17   : > { %v2631_v55 = vpop.eup %2630 }
 0xa18   : > { %v2191_v5 = vmul.f32 %v2631_v55, %v2183_v61 }
 0xa1a   : > { %v2198_v7 = vmul.f32 %v2366_v4, %v2191_v5 }
 0xa1c   : > { %v2205_v8 = vadd.f32 %v2367_v6, %v2198_v7 }
 0xa1e   : > { %2206 = vst.msk [vmem:[%s615_s19] sm:$0xff] %vm647_vm1, %v2205_v8 }
 0xa1f   : > { %2699 = shalt.err (!%p2696_p5)
}
 0xa20   : > { %s2700_s23 = scalar_lea.hbm %s2219_s3, 128  ;;  %s2704_s12 = scalar_lea.hbm %s3376_s22, 256 }
 0xa21   : > { %p2701_p9 = scmp.ne.s32.totalorder %s2219_s3, %s2700_s23  ;;  %p2705_p4 = scmp.lt.s32.totalorder %s2219_s3, %s3376_s22 }
 0xa22   : > { %p2706_p6 = scmp.lt.s32.totalorder %s2704_s12, %s2700_s23 }
 0xa23   : > { %p2702_p12 = pnand %p2701_p9, %p3377_p11 }
 0xa24   : > { %p2707_p8 = por %p2706_p6, %p2705_p4 }
 0xa25   : > { %p2703_p1 = pneg %p2702_p12 }
 0xa27   : > { %p2708_p3 = pnand %p2707_p8, %p2703_p1 }
 0xa29   : > { %2711 = shalt.err (!%p2708_p3)
}
 0xa2a   : > { %2526 = dma.vmem_to_hbm [thread:$0]  (%p3377_p11), %s2222_s20, 128, %s2219_s3, %s2208_s4  }
 0xa2b PF: > { %s3378_s19 = sld [smem:[#allocation11_spill]]  ;;  %p3381_p10 = scmp.ge.s32.totalorder %s2754_s30, 2 }
 0xa2c   : > { %s3379_s2 = sld [smem:[#allocation12_spill]] }
 0xa31   : > { %s2233_s24 = sand.u32 1, %s3378_s19  }
 0xa32   : > { %p3380_p7 = scmp.ne.s32.totalorder %s3379_s2, 0  ;;  %s2234_s27 = scalar_lea.sflag [#allocation4], %s2233_s24 }
 0xa34   : > { %p2537_p2 = pnand %p3381_p10, %p3380_p7 }
 0xa36   : > { %p2538_p13 = pneg %p2537_p2 }
 0xa38   : > { %2737 = dma.done.wait (%p2538_p13), %s2234_s27, 128  }
 0xa39   : > { %2739 = vsyncadd (%p2538_p13), %s2234_s27, 4294967168  ;;  %s3382_s30 = sld [smem:[#allocation13_spill]]  ;;  %s3384_s27 = smov %s2746_s28 }
 0xa3a   : > { %s3383_s17 = sld [smem:[#allocation14_spill]]  ;;  %s3385_s28 = smov %s2750_s29 }
 0xa3f   : > { %p32_p0 = scmp.ge.s32.totalorder %s3382_s30, 4  }
 0xa40   : > { %s3386_s29 = smov %s3383_s17 }
 0xa41   :  { %34 = sbr.rel (!%p32_p0) target bundleno = 19 (0x13), region = 144 }
 0xa46   :  { %2239 = vsyncpa [#allocation3], 1 }
 0xa47   :  { %2241 = vsyncpa [#allocation3 + $0x1], 1 }
 0xa48   :  { %2242 = vsyncpa [#allocation6], 1 }
 0xa49   :  { %2243 = vsyncpa [#allocation4], 1 }
 0xa4a   :  { %2245 = vsyncpa [#allocation4 + $0x1], 1 }

</bundles_post_ra>
